<compile_context>
chip_gen: v5e
topology: v5e:2x2
jax: 0.10.0
libtpu: 0.0.40
codegen_flags: <defaults>
</compile_context>

<pallas_src>
import functools

import jax
import jax.numpy as jnp
from jax.experimental import pallas as pl
from jax.experimental.pallas import tpu as pltpu


def _round_up(x, m):
    return (x + m - 1) // m * m


def _cdiv(a, b):
    return (a + b - 1) // b


def _vmem_limit(bytes_needed):
    # Explicit scoped-VMEM limit: actual footprint + slack, clamped to
    # [16 MiB, 48 MiB] (<= 48 MiB leaves headroom on v7x's 64 MiB VMEM).
    return int(min(48 << 20, max(int(bytes_needed) + (4 << 20), 16 << 20)))


# --------------------- fused RoIPool(max) + avg-pool kernel ------------------
def _roi_pool_avg_kernel(idx_ref, bins_ref,          # scalar prefetch (SMEM)
                         x_ref,                      # (N*H, W, Ct) VMEM
                         out_ref,                    # (R_blk, Ct) VMEM
                         *, pooled_size, roi_block, max_bin_h, feat_h):
    P = pooled_size
    rb = pl.program_id(1)
    _, W, Ct = x_ref.shape
    neg_inf = jnp.float32(-jnp.inf)
    inv_bins = jnp.float32(1.0 / (P * P))

    # Hoisted 2-D iota for the W (sublane) mask.
    w_idx = jax.lax.broadcasted_iota(jnp.int32, (W, 1), 0)

    @pl.loop(0, roi_block)
    def _(r):
        roi = rb * roi_block + r
        img_row0 = idx_ref[roi] * feat_h             # first feature row of this image
        base = roi * 4 * P                           # per-roi offset into packed bins
        acc = jnp.zeros((1, Ct), jnp.float32)        # running sum of bin maxima

        for ph in range(P):                          # static unroll over pooled rows
            hs = bins_ref[base + ph]
            he = bins_ref[base + P + ph]
            # Bounded window: at most max_bin_h feature rows per pooled row;
            # clamp the start so all loads stay inside this image's rows.
            h0 = jnp.minimum(hs, feat_h - max_bin_h)

            def h_body(i, carry):
                h = h0 + i
                keep = jnp.logical_and(h >= hs, h < he)
                row = x_ref[img_row0 + h, :, :]       # (W, Ct)
                return jnp.maximum(carry, jnp.where(keep, row, neg_inf))

            row_slab = jax.lax.fori_loop(
                0, max_bin_h, h_body,
                jnp.full((W, Ct), neg_inf, jnp.float32), unroll=True)

            for pw in range(P):                      # static unroll over pooled cols
                ws = bins_ref[base + 2 * P + pw]
                we = bins_ref[base + 3 * P + pw]
                wmask = jnp.logical_and(w_idx >= ws, w_idx < we)
                m = jnp.max(jnp.where(wmask, row_slab, neg_inf),
                            axis=0, keepdims=True)
                nonempty = jnp.logical_and(he > hs, we > ws)   # torchvision: empty bin -> 0
                acc = acc + jnp.where(nonempty, m, jnp.float32(0.0))

        # fused global average pool over the P*P bins; write this roi's row.
        out_ref[pl.ds(r, 1), :] = (acc * inv_bins).astype(out_ref.dtype)


def _roi_bins(rois_fm, spatial_scale, pooled_size, height, width):
    """torchvision RoIPool bin-boundary quantization (per-roi scalar metadata)."""
    def _rnd(v):
        # torchvision uses std::round (half away from zero); coords are >= 0.
        return jnp.floor(v * spatial_scale + 0.5).astype(jnp.int32)

    rsw = _rnd(rois_fm[:, 0])
    rsh = _rnd(rois_fm[:, 1])
    rew = _rnd(rois_fm[:, 2])
    reh = _rnd(rois_fm[:, 3])
    roi_w = jnp.maximum(rew - rsw + 1, 1).astype(jnp.float32)
    roi_h = jnp.maximum(reh - rsh + 1, 1).astype(jnp.float32)
    bin_w = roi_w / pooled_size
    bin_h = roi_h / pooled_size
    p = jnp.arange(pooled_size, dtype=jnp.float32)
    hstart = jnp.clip(jnp.floor(p[None] * bin_h[:, None]).astype(jnp.int32) + rsh[:, None], 0, height)
    hend = jnp.clip(jnp.ceil((p[None] + 1.0) * bin_h[:, None]).astype(jnp.int32) + rsh[:, None], 0, height)
    wstart = jnp.clip(jnp.floor(p[None] * bin_w[:, None]).astype(jnp.int32) + rsw[:, None], 0, width)
    wend = jnp.clip(jnp.ceil((p[None] + 1.0) * bin_w[:, None]).astype(jnp.int32) + rsw[:, None], 0, width)
    return hstart, hend, wstart, wend


def roi_pool_avg(x_nhwc_pad, roi_indices, rois_fm, *, pooled_size, spatial_scale,
                 n_rois_pad, roi_block, c_tile):
    """RoIPool(max, PxP) + global average pool -> (n_rois_pad, C_pad)."""
    n, h, w, c_pad = x_nhwc_pad.shape
    n_rois = rois_fm.shape[0]
    P = pooled_size

    # Bound on feature rows per pooled bin for ROIs inside the image.
    max_bin_h = min(h, _cdiv(h + 1, P) + 2)
    # TODO(synk): ROIs extending far beyond the image can have clipped bins taller
    # than max_bin_h; standard Faster R-CNN ROIs are pre-clipped so the bound holds.

    hs_, he_, ws_, we_ = _roi_bins(rois_fm, spatial_scale, P, h, w)
    # per roi: [hs(P), he(P), ws(P), we(P)]; padded ROIs get all-zero (empty) bins.
    bins2d = jnp.concatenate([hs_, he_, ws_, we_], axis=1).astype(jnp.int32)
    bins2d = jnp.pad(bins2d, ((0, n_rois_pad - n_rois), (0, 0)))
    bins = bins2d.reshape(-1)
    idx = jnp.pad(roi_indices.reshape(-1).astype(jnp.int32), (0, n_rois_pad - n_rois))

    # Flatten (N, H) so the kernel uses one dynamic leading index per row load.
    x_flat = x_nhwc_pad.reshape(n * h, w, c_pad)

    num_c_tiles = c_pad // c_tile
    num_roi_blocks = n_rois_pad // roi_block

    x_block_bytes = n * h * w * c_tile * x_flat.dtype.itemsize
    out_block_bytes = roi_block * c_tile * x_flat.dtype.itemsize

    kernel = functools.partial(_roi_pool_avg_kernel, pooled_size=P,
                               roi_block=roi_block, max_bin_h=max_bin_h, feat_h=h)
    return pl.pallas_call(
        kernel,
        out_shape=jax.ShapeDtypeStruct((n_rois_pad, c_pad), x_flat.dtype),
        grid_spec=pltpu.PrefetchScalarGridSpec(
            num_scalar_prefetch=2,
            # C-tile axis outer: the (N*H, W, Ct) slab block index is constant
            # across ROI blocks, so it is DMA'd once per C tile and reused.
            grid=(num_c_tiles, num_roi_blocks),
            in_specs=[pl.BlockSpec(
                (n * h, w, c_tile),
                lambda cb, rb, idx, bins: (0, 0, cb))],
            out_specs=pl.BlockSpec(
                (roi_block, c_tile),
                lambda cb, rb, idx, bins: (rb, cb)),
        ),
        compiler_params=pltpu.CompilerParams(
            dimension_semantics=("parallel", "parallel"),
            vmem_limit_bytes=_vmem_limit(2 * x_block_bytes + 2 * out_block_bytes)),
    )(idx, bins, x_flat)


# ------------------------ classifier / fc head kernel ------------------------
def _head_kernel(pool_ref, wc_ref, bc_ref, wo_ref, bo_ref, out_ref):
    # bf16 MXU operands with f32 accumulation (native fast path on v5e/v6e/v7x).
    fc_in = pool_ref[...].astype(jnp.bfloat16)                       # (bm, C_pad)
    fc7 = jnp.dot(fc_in, wc_ref[...], preferred_element_type=jnp.float32) + bc_ref[...]
    fc7 = jnp.maximum(fc7, 0.0)                                      # classifier stand-in
    # single fused, lane-dense (padded to x128) matmul for loc + score
    out_ref[...] = (jnp.dot(fc7.astype(jnp.bfloat16), wo_ref[...],
                            preferred_element_type=jnp.float32)
                    + bo_ref[...]).astype(out_ref.dtype)


class Resnet50RoIHeadPallas:
    """Pallas-TPU port of Resnet50RoIHead.forward (synthetic small shapes)."""

    def __init__(self, n_class, roi_size, spatial_scale, in_channels, feat_dim, key):
        self.n_class = n_class
        self.roi_size = roi_size
        self.spatial_scale = spatial_scale
        self.in_channels = in_channels
        self.feat_dim = feat_dim
        self.c_pad = _round_up(in_channels, 128)       # lane-dense pooled features
        self.feat_pad = _round_up(feat_dim, 128)
        n_out = n_class * 4 + n_class
        self.n_out_pad = _round_up(n_out, 128)

        k1, k2, k3 = jax.random.split(key, 3)
        # TODO(synk): the PyTorch `classifier` argument is an externally supplied
        # ResNet-50 layer4 + avgpool sub-network; modeled here as global-avg-pool
        # (fused into the RoI kernel) + Linear(in_channels, feat_dim) + ReLU.
        w_cls = 0.01 * jax.random.normal(k1, (in_channels, feat_dim), jnp.float32)
        self.w_cls = jnp.pad(w_cls, ((0, self.c_pad - in_channels),
                                     (0, self.feat_pad - feat_dim))).astype(jnp.bfloat16)
        self.b_cls = jnp.zeros((1, self.feat_pad), jnp.float32)
        # nn.Linear(feat, n_class*4) ~ N(0, 0.001), nn.Linear(feat, n_class) ~ N(0, 0.01),
        # biases zero; fused along the output dim and zero-padded to 128-lane multiples.
        w_loc = 0.001 * jax.random.normal(k2, (feat_dim, n_class * 4), jnp.float32)
        w_score = 0.01 * jax.random.normal(k3, (feat_dim, n_class), jnp.float32)
        w_out = jnp.concatenate([w_loc, w_score], axis=1)
        self.w_out = jnp.pad(w_out, ((0, self.feat_pad - feat_dim),
                                     (0, self.n_out_pad - n_out))).astype(jnp.bfloat16)
        self.b_out = jnp.zeros((1, self.n_out_pad), jnp.float32)

    def __call__(self, x, rois, roi_indices, img_size):
        # x: (N, C, H, W) NCHW, rois: (N, R, 4) (x1,y1,x2,y2) image coords,
        # roi_indices: (N, R) int, img_size: (img_h, img_w)
        n, c, h, w = x.shape
        assert c == self.in_channels
        rois_per_image = rois.shape[1]
        n_rois = n * rois_per_image
        rois_flat = rois.reshape(-1, 4).astype(jnp.float32)
        idx_flat = roi_indices.reshape(-1).astype(jnp.int32)
        # rois -> feature-map coordinates (x by W/img_w, y by H/img_h), as in forward().
        scale = jnp.array([w / img_size[1], h / img_size[0],
                           w / img_size[1], h / img_size[0]], jnp.float32)
        rois_fm = rois_flat * scale[None, :]
        # Note: matching the PyTorch module, torchvision RoIPool(spatial_scale) is
        # applied ON TOP of the already feature-map-scaled coords (canonically 1.0).

        # Head row tile: 256 fills the v6e/v7x 256-wide MXU; small inputs use <=128.
        bm = 256 if n_rois >= 256 else min(128, _round_up(n_rois, 8))
        n_rois_pad = _round_up(n_rois, bm)
        roi_block = min(bm, 8)                      # ROIs per ROI-kernel grid step
        c_tile = 256 if self.c_pad % 256 == 0 else 128

        # TODO(synk): NCHW->NHWC (+ lane pad when C<128) is wrapper-level layout
        # plumbing; produce NHWC upstream to avoid this extra HBM pass.
        x_nhwc = jnp.transpose(x, (0, 2, 3, 1))                      # (N, H, W, C)
        if self.c_pad != c:
            x_nhwc = jnp.pad(x_nhwc, ((0, 0), (0, 0), (0, 0), (0, self.c_pad - c)))

        # Kernel 1: fused RoIPool(max) + avg pool -> head-ready padded slab.
        pool = roi_pool_avg(x_nhwc, idx_flat, rois_fm,
                            pooled_size=self.roi_size,
                            spatial_scale=self.spatial_scale,
                            n_rois_pad=n_rois_pad, roi_block=roi_block,
                            c_tile=c_tile)                           # (n_rois_pad, C_pad)

        head_bytes = (2 * (bm * self.c_pad + bm * self.n_out_pad) * 4
                      + (self.w_cls.size + self.w_out.size) * 2
                      + (self.b_cls.size + self.b_out.size) * 4)
        out = pl.pallas_call(
            _head_kernel,
            out_shape=jax.ShapeDtypeStruct((n_rois_pad, self.n_out_pad), jnp.float32),
            grid_spec=pltpu.PrefetchScalarGridSpec(
                num_scalar_prefetch=0,
                grid=(n_rois_pad // bm,),
                in_specs=[pl.BlockSpec((bm, self.c_pad), lambda i: (i, 0)),
                          # weights / biases: whole-array VMEM residents
                          # (single copy, no double-buffering).
                          pl.BlockSpec(memory_space=pltpu.MemorySpace.VMEM),
                          pl.BlockSpec(memory_space=pltpu.MemorySpace.VMEM),
                          pl.BlockSpec(memory_space=pltpu.MemorySpace.VMEM),
                          pl.BlockSpec(memory_space=pltpu.MemorySpace.VMEM)],
                out_specs=pl.BlockSpec((bm, self.n_out_pad), lambda i: (i, 0)),
            ),
            compiler_params=pltpu.CompilerParams(
                dimension_semantics=("parallel",),
                vmem_limit_bytes=_vmem_limit(head_bytes)),
        )(pool, self.w_cls, self.b_cls, self.w_out, self.b_out)

        n4 = self.n_class * 4
        loc = out[:n_rois, :n4]
        score = out[:n_rois, n4:n4 + self.n_class]
        roi_cls_locs = loc.reshape(n, -1, n4)
        roi_scores = score.reshape(n, -1, self.n_class)
        return roi_cls_locs, roi_scores


if __name__ == "__main__":
    key = jax.random.PRNGKey(0)
    kx, k1, k2, kw = jax.random.split(key, 4)

    N, C, H, W = 2, 32, 16, 16     # feature map (NCHW)
    R = 8                          # rois per image
    n_class = 5
    roi_size = 4
    img_size = (128, 128)          # (img_h, img_w)

    x = jax.random.normal(kx, (N, C, H, W), jnp.float32)
    xy1 = jax.random.uniform(k1, (N, R, 2), minval=0.0, maxval=64.0)
    wh = jax.random.uniform(k2, (N, R, 2), minval=16.0, maxval=64.0)
    xy2 = jnp.minimum(xy1 + wh, 127.0)
    rois = jnp.concatenate([xy1, xy2], axis=-1)                  # (x1, y1, x2, y2)
    roi_indices = jnp.broadcast_to(jnp.arange(N, dtype=jnp.int32)[:, None], (N, R))

    head = Resnet50RoIHeadPallas(n_class=n_class, roi_size=roi_size,
                                 spatial_scale=1.0, in_channels=C,
                                 feat_dim=32, key=kw)
    roi_cls_locs, roi_scores = head(x, rois, roi_indices, img_size)
    jax.block_until_ready((roi_cls_locs, roi_scores))

    assert roi_cls_locs.shape == (N, R, n_class * 4)
    assert roi_scores.shape == (N, R, n_class)
    print("KERNEL_OK")
</pallas_src>

<mosaic_0001>
module attributes {stable_mosaic.version = 11 : i64} {
  func.func @_roi_pool_avg_kernel(%arg0: i32, %arg1: i32, %arg2: memref<16xi32, #tpu.memory_space<smem>>, %arg3: memref<256xi32, #tpu.memory_space<smem>>, %arg4: memref<32x16x128xf32, #tpu.memory_space<vmem>>, %arg5: memref<8x128xf32, #tpu.memory_space<vmem>>) attributes {dimension_semantics = [#tpu.dimension_semantics<parallel>, #tpu.dimension_semantics<parallel>], iteration_bounds = array<i64: 1, 2>, scalar_prefetch = 2 : i64, scratch_operands = 0 : i64, tpu.core_type = #tpu.core_type<tc>, window_params = [{transform_indices = @transform_0, window_bounds = array<i64: 32, 16, 128>}, {transform_indices = @transform_1, window_bounds = array<i64: 8, 128>}]} {
    %0 = tpu.iota {dimensions = array<i32: 0>} : vector<16x1xi32>
    %cst = arith.constant 0xFF800000 : f32
    %cst_0 = arith.constant 6.250000e-02 : f32
    %c0_i32 = arith.constant 0 : i32
    %c8_i32 = arith.constant 8 : i32
    %1 = arith.addi %c0_i32, %c8_i32 : i32
    %c1_i32 = arith.constant 1 : i32
    scf.for %arg6 = %c0_i32 to %1 step %c1_i32  : i32 {
      %c1_i32_2 = arith.constant 1 : i32
      %2 = arith.muli %arg6, %c1_i32_2 : i32
      %c0_i32_3 = arith.constant 0 : i32
      %3 = arith.addi %c0_i32_3, %2 : i32
      %c8_i32_4 = arith.constant 8 : i32
      %4 = arith.muli %arg1, %c8_i32_4 : i32
      %5 = arith.addi %4, %3 : i32
      %6 = arith.index_cast %5 : i32 to index
      %7 = memref.load %arg2[%6] : memref<16xi32, #tpu.memory_space<smem>>
      %c16_i32 = arith.constant 16 : i32
      %8 = arith.muli %7, %c16_i32 : i32
      %c4_i32 = arith.constant 4 : i32
      %9 = arith.muli %5, %c4_i32 : i32
      %c4_i32_5 = arith.constant 4 : i32
      %10 = arith.muli %9, %c4_i32_5 : i32
      %cst_6 = arith.constant 0.000000e+00 : f32
      %11 = vector.broadcast %cst_6 : f32 to vector<1x128xf32>
      %c0_i32_7 = arith.constant 0 : i32
      %12 = arith.addi %10, %c0_i32_7 : i32
      %13 = arith.index_cast %12 : i32 to index
      %14 = memref.load %arg3[%13] : memref<256xi32, #tpu.memory_space<smem>>
      %c4_i32_8 = arith.constant 4 : i32
      %15 = arith.addi %10, %c4_i32_8 : i32
      %c0_i32_9 = arith.constant 0 : i32
      %16 = arith.addi %15, %c0_i32_9 : i32
      %17 = arith.index_cast %16 : i32 to index
      %18 = memref.load %arg3[%17] : memref<256xi32, #tpu.memory_space<smem>>
      %c9_i32 = arith.constant 9 : i32
      %19 = arith.minsi %14, %c9_i32 : i32
      %20 = vector.broadcast %cst : f32 to vector<16x128xf32>
      %c0_i32_10 = arith.constant 0 : i32
      %21 = arith.addi %19, %c0_i32_10 : i32
      %22 = arith.cmpi sge, %21, %14 : i32
      %23 = arith.cmpi slt, %21, %18 : i32
      %24 = arith.andi %22, %23 : i1
      %25 = arith.addi %8, %21 : i32
      %26 = arith.index_cast %25 : i32 to index
      %c0 = arith.constant 0 : index
      %c0_11 = arith.constant 0 : index
      %27 = vector.load %arg4[%26, %c0, %c0_11] : memref<32x16x128xf32, #tpu.memory_space<vmem>>, vector<1x16x128xf32>
      %28 = vector.shape_cast %27 : vector<1x16x128xf32> to vector<16x128xf32>
      %29 = vector.broadcast %cst : f32 to vector<16x128xf32>
      %30 = arith.select %24, %28, %29 : vector<16x128xf32>
      %31 = arith.maximumf %20, %30 : vector<16x128xf32>
      %c1_i32_12 = arith.constant 1 : i32
      %32 = arith.addi %19, %c1_i32_12 : i32
      %33 = arith.cmpi sge, %32, %14 : i32
      %34 = arith.cmpi slt, %32, %18 : i32
      %35 = arith.andi %33, %34 : i1
      %36 = arith.addi %8, %32 : i32
      %37 = arith.index_cast %36 : i32 to index
      %c0_13 = arith.constant 0 : index
      %c0_14 = arith.constant 0 : index
      %38 = vector.load %arg4[%37, %c0_13, %c0_14] : memref<32x16x128xf32, #tpu.memory_space<vmem>>, vector<1x16x128xf32>
      %39 = vector.shape_cast %38 : vector<1x16x128xf32> to vector<16x128xf32>
      %40 = vector.broadcast %cst : f32 to vector<16x128xf32>
      %41 = arith.select %35, %39, %40 : vector<16x128xf32>
      %42 = arith.maximumf %31, %41 : vector<16x128xf32>
      %c2_i32 = arith.constant 2 : i32
      %43 = arith.addi %19, %c2_i32 : i32
      %44 = arith.cmpi sge, %43, %14 : i32
      %45 = arith.cmpi slt, %43, %18 : i32
      %46 = arith.andi %44, %45 : i1
      %47 = arith.addi %8, %43 : i32
      %48 = arith.index_cast %47 : i32 to index
      %c0_15 = arith.constant 0 : index
      %c0_16 = arith.constant 0 : index
      %49 = vector.load %arg4[%48, %c0_15, %c0_16] : memref<32x16x128xf32, #tpu.memory_space<vmem>>, vector<1x16x128xf32>
      %50 = vector.shape_cast %49 : vector<1x16x128xf32> to vector<16x128xf32>
      %51 = vector.broadcast %cst : f32 to vector<16x128xf32>
      %52 = arith.select %46, %50, %51 : vector<16x128xf32>
      %53 = arith.maximumf %42, %52 : vector<16x128xf32>
      %c3_i32 = arith.constant 3 : i32
      %54 = arith.addi %19, %c3_i32 : i32
      %55 = arith.cmpi sge, %54, %14 : i32
      %56 = arith.cmpi slt, %54, %18 : i32
      %57 = arith.andi %55, %56 : i1
      %58 = arith.addi %8, %54 : i32
      %59 = arith.index_cast %58 : i32 to index
      %c0_17 = arith.constant 0 : index
      %c0_18 = arith.constant 0 : index
      %60 = vector.load %arg4[%59, %c0_17, %c0_18] : memref<32x16x128xf32, #tpu.memory_space<vmem>>, vector<1x16x128xf32>
      %61 = vector.shape_cast %60 : vector<1x16x128xf32> to vector<16x128xf32>
      %62 = vector.broadcast %cst : f32 to vector<16x128xf32>
      %63 = arith.select %57, %61, %62 : vector<16x128xf32>
      %64 = arith.maximumf %53, %63 : vector<16x128xf32>
      %c4_i32_19 = arith.constant 4 : i32
      %65 = arith.addi %19, %c4_i32_19 : i32
      %66 = arith.cmpi sge, %65, %14 : i32
      %67 = arith.cmpi slt, %65, %18 : i32
      %68 = arith.andi %66, %67 : i1
      %69 = arith.addi %8, %65 : i32
      %70 = arith.index_cast %69 : i32 to index
      %c0_20 = arith.constant 0 : index
      %c0_21 = arith.constant 0 : index
      %71 = vector.load %arg4[%70, %c0_20, %c0_21] : memref<32x16x128xf32, #tpu.memory_space<vmem>>, vector<1x16x128xf32>
      %72 = vector.shape_cast %71 : vector<1x16x128xf32> to vector<16x128xf32>
      %73 = vector.broadcast %cst : f32 to vector<16x128xf32>
      %74 = arith.select %68, %72, %73 : vector<16x128xf32>
      %75 = arith.maximumf %64, %74 : vector<16x128xf32>
      %c5_i32 = arith.constant 5 : i32
      %76 = arith.addi %19, %c5_i32 : i32
      %77 = arith.cmpi sge, %76, %14 : i32
      %78 = arith.cmpi slt, %76, %18 : i32
      %79 = arith.andi %77, %78 : i1
      %80 = arith.addi %8, %76 : i32
      %81 = arith.index_cast %80 : i32 to index
      %c0_22 = arith.constant 0 : index
      %c0_23 = arith.constant 0 : index
      %82 = vector.load %arg4[%81, %c0_22, %c0_23] : memref<32x16x128xf32, #tpu.memory_space<vmem>>, vector<1x16x128xf32>
      %83 = vector.shape_cast %82 : vector<1x16x128xf32> to vector<16x128xf32>
      %84 = vector.broadcast %cst : f32 to vector<16x128xf32>
      %85 = arith.select %79, %83, %84 : vector<16x128xf32>
      %86 = arith.maximumf %75, %85 : vector<16x128xf32>
      %c6_i32 = arith.constant 6 : i32
      %87 = arith.addi %19, %c6_i32 : i32
      %88 = arith.cmpi sge, %87, %14 : i32
      %89 = arith.cmpi slt, %87, %18 : i32
      %90 = arith.andi %88, %89 : i1
      %91 = arith.addi %8, %87 : i32
      %92 = arith.index_cast %91 : i32 to index
      %c0_24 = arith.constant 0 : index
      %c0_25 = arith.constant 0 : index
      %93 = vector.load %arg4[%92, %c0_24, %c0_25] : memref<32x16x128xf32, #tpu.memory_space<vmem>>, vector<1x16x128xf32>
      %94 = vector.shape_cast %93 : vector<1x16x128xf32> to vector<16x128xf32>
      %95 = vector.broadcast %cst : f32 to vector<16x128xf32>
      %96 = arith.select %90, %94, %95 : vector<16x128xf32>
      %97 = arith.maximumf %86, %96 : vector<16x128xf32>
      %c7_i32 = arith.constant 7 : i32
      %c8_i32_26 = arith.constant 8 : i32
      %98 = arith.addi %10, %c8_i32_26 : i32
      %c0_i32_27 = arith.constant 0 : i32
      %99 = arith.addi %98, %c0_i32_27 : i32
      %100 = arith.index_cast %99 : i32 to index
      %101 = memref.load %arg3[%100] : memref<256xi32, #tpu.memory_space<smem>>
      %c12_i32 = arith.constant 12 : i32
      %102 = arith.addi %10, %c12_i32 : i32
      %c0_i32_28 = arith.constant 0 : i32
      %103 = arith.addi %102, %c0_i32_28 : i32
      %104 = arith.index_cast %103 : i32 to index
      %105 = memref.load %arg3[%104] : memref<256xi32, #tpu.memory_space<smem>>
      %106 = vector.broadcast %101 : i32 to vector<16x1xi32>
      %107 = arith.cmpi sge, %0, %106 : vector<16x1xi32>
      %108 = vector.broadcast %105 : i32 to vector<16x1xi32>
      %109 = arith.cmpi slt, %0, %108 : vector<16x1xi32>
      %110 = arith.andi %107, %109 : vector<16x1xi1>
      %111 = vector.shape_cast %110 : vector<16x1xi1> to vector<16x1xi1>
      %112 = vector.broadcast %111 : vector<16x1xi1> to vector<16x128xi1>
      %113 = vector.broadcast %cst : f32 to vector<16x128xf32>
      %114 = arith.select %112, %97, %113 : vector<16x128xi1>, vector<16x128xf32>
      %cst_29 = arith.constant dense<0xFF800000> : vector<128xf32>
      %115 = vector.multi_reduction <maximumf>, %114, %cst_29 [0] : vector<16x128xf32> to vector<128xf32>
      %116 = vector.shape_cast %115 : vector<128xf32> to vector<1x128xf32>
      %117 = arith.cmpi sgt, %18, %14 : i32
      %118 = arith.cmpi sgt, %105, %101 : i32
      %119 = arith.andi %117, %118 : i1
      %cst_30 = arith.constant 0.000000e+00 : f32
      %120 = vector.broadcast %cst_30 : f32 to vector<1x128xf32>
      %121 = arith.select %119, %116, %120 : vector<1x128xf32>
      %122 = arith.addf %11, %121 : vector<1x128xf32>
      %c8_i32_31 = arith.constant 8 : i32
      %123 = arith.addi %10, %c8_i32_31 : i32
      %c1_i32_32 = arith.constant 1 : i32
      %124 = arith.addi %123, %c1_i32_32 : i32
      %125 = arith.index_cast %124 : i32 to index
      %126 = memref.load %arg3[%125] : memref<256xi32, #tpu.memory_space<smem>>
      %c12_i32_33 = arith.constant 12 : i32
      %127 = arith.addi %10, %c12_i32_33 : i32
      %c1_i32_34 = arith.constant 1 : i32
      %128 = arith.addi %127, %c1_i32_34 : i32
      %129 = arith.index_cast %128 : i32 to index
      %130 = memref.load %arg3[%129] : memref<256xi32, #tpu.memory_space<smem>>
      %131 = vector.broadcast %126 : i32 to vector<16x1xi32>
      %132 = arith.cmpi sge, %0, %131 : vector<16x1xi32>
      %133 = vector.broadcast %130 : i32 to vector<16x1xi32>
      %134 = arith.cmpi slt, %0, %133 : vector<16x1xi32>
      %135 = arith.andi %132, %134 : vector<16x1xi1>
      %136 = vector.shape_cast %135 : vector<16x1xi1> to vector<16x1xi1>
      %137 = vector.broadcast %136 : vector<16x1xi1> to vector<16x128xi1>
      %138 = vector.broadcast %cst : f32 to vector<16x128xf32>
      %139 = arith.select %137, %97, %138 : vector<16x128xi1>, vector<16x128xf32>
      %cst_35 = arith.constant dense<0xFF800000> : vector<128xf32>
      %140 = vector.multi_reduction <maximumf>, %139, %cst_35 [0] : vector<16x128xf32> to vector<128xf32>
      %141 = vector.shape_cast %140 : vector<128xf32> to vector<1x128xf32>
      %142 = arith.cmpi sgt, %18, %14 : i32
      %143 = arith.cmpi sgt, %130, %126 : i32
      %144 = arith.andi %142, %143 : i1
      %cst_36 = arith.constant 0.000000e+00 : f32
      %145 = vector.broadcast %cst_36 : f32 to vector<1x128xf32>
      %146 = arith.select %144, %141, %145 : vector<1x128xf32>
      %147 = arith.addf %122, %146 : vector<1x128xf32>
      %c8_i32_37 = arith.constant 8 : i32
      %148 = arith.addi %10, %c8_i32_37 : i32
      %c2_i32_38 = arith.constant 2 : i32
      %149 = arith.addi %148, %c2_i32_38 : i32
      %150 = arith.index_cast %149 : i32 to index
      %151 = memref.load %arg3[%150] : memref<256xi32, #tpu.memory_space<smem>>
      %c12_i32_39 = arith.constant 12 : i32
      %152 = arith.addi %10, %c12_i32_39 : i32
      %c2_i32_40 = arith.constant 2 : i32
      %153 = arith.addi %152, %c2_i32_40 : i32
      %154 = arith.index_cast %153 : i32 to index
      %155 = memref.load %arg3[%154] : memref<256xi32, #tpu.memory_space<smem>>
      %156 = vector.broadcast %151 : i32 to vector<16x1xi32>
      %157 = arith.cmpi sge, %0, %156 : vector<16x1xi32>
      %158 = vector.broadcast %155 : i32 to vector<16x1xi32>
      %159 = arith.cmpi slt, %0, %158 : vector<16x1xi32>
      %160 = arith.andi %157, %159 : vector<16x1xi1>
      %161 = vector.shape_cast %160 : vector<16x1xi1> to vector<16x1xi1>
      %162 = vector.broadcast %161 : vector<16x1xi1> to vector<16x128xi1>
      %163 = vector.broadcast %cst : f32 to vector<16x128xf32>
      %164 = arith.select %162, %97, %163 : vector<16x128xi1>, vector<16x128xf32>
      %cst_41 = arith.constant dense<0xFF800000> : vector<128xf32>
      %165 = vector.multi_reduction <maximumf>, %164, %cst_41 [0] : vector<16x128xf32> to vector<128xf32>
      %166 = vector.shape_cast %165 : vector<128xf32> to vector<1x128xf32>
      %167 = arith.cmpi sgt, %18, %14 : i32
      %168 = arith.cmpi sgt, %155, %151 : i32
      %169 = arith.andi %167, %168 : i1
      %cst_42 = arith.constant 0.000000e+00 : f32
      %170 = vector.broadcast %cst_42 : f32 to vector<1x128xf32>
      %171 = arith.select %169, %166, %170 : vector<1x128xf32>
      %172 = arith.addf %147, %171 : vector<1x128xf32>
      %c8_i32_43 = arith.constant 8 : i32
      %173 = arith.addi %10, %c8_i32_43 : i32
      %c3_i32_44 = arith.constant 3 : i32
      %174 = arith.addi %173, %c3_i32_44 : i32
      %175 = arith.index_cast %174 : i32 to index
      %176 = memref.load %arg3[%175] : memref<256xi32, #tpu.memory_space<smem>>
      %c12_i32_45 = arith.constant 12 : i32
      %177 = arith.addi %10, %c12_i32_45 : i32
      %c3_i32_46 = arith.constant 3 : i32
      %178 = arith.addi %177, %c3_i32_46 : i32
      %179 = arith.index_cast %178 : i32 to index
      %180 = memref.load %arg3[%179] : memref<256xi32, #tpu.memory_space<smem>>
      %181 = vector.broadcast %176 : i32 to vector<16x1xi32>
      %182 = arith.cmpi sge, %0, %181 : vector<16x1xi32>
      %183 = vector.broadcast %180 : i32 to vector<16x1xi32>
      %184 = arith.cmpi slt, %0, %183 : vector<16x1xi32>
      %185 = arith.andi %182, %184 : vector<16x1xi1>
      %186 = vector.shape_cast %185 : vector<16x1xi1> to vector<16x1xi1>
      %187 = vector.broadcast %186 : vector<16x1xi1> to vector<16x128xi1>
      %188 = vector.broadcast %cst : f32 to vector<16x128xf32>
      %189 = arith.select %187, %97, %188 : vector<16x128xi1>, vector<16x128xf32>
      %cst_47 = arith.constant dense<0xFF800000> : vector<128xf32>
      %190 = vector.multi_reduction <maximumf>, %189, %cst_47 [0] : vector<16x128xf32> to vector<128xf32>
      %191 = vector.shape_cast %190 : vector<128xf32> to vector<1x128xf32>
      %192 = arith.cmpi sgt, %18, %14 : i32
      %193 = arith.cmpi sgt, %180, %176 : i32
      %194 = arith.andi %192, %193 : i1
      %cst_48 = arith.constant 0.000000e+00 : f32
      %195 = vector.broadcast %cst_48 : f32 to vector<1x128xf32>
      %196 = arith.select %194, %191, %195 : vector<1x128xf32>
      %197 = arith.addf %172, %196 : vector<1x128xf32>
      %c1_i32_49 = arith.constant 1 : i32
      %198 = arith.addi %10, %c1_i32_49 : i32
      %199 = arith.index_cast %198 : i32 to index
      %200 = memref.load %arg3[%199] : memref<256xi32, #tpu.memory_space<smem>>
      %c4_i32_50 = arith.constant 4 : i32
      %201 = arith.addi %10, %c4_i32_50 : i32
      %c1_i32_51 = arith.constant 1 : i32
      %202 = arith.addi %201, %c1_i32_51 : i32
      %203 = arith.index_cast %202 : i32 to index
      %204 = memref.load %arg3[%203] : memref<256xi32, #tpu.memory_space<smem>>
      %c9_i32_52 = arith.constant 9 : i32
      %205 = arith.minsi %200, %c9_i32_52 : i32
      %206 = vector.broadcast %cst : f32 to vector<16x128xf32>
      %c0_i32_53 = arith.constant 0 : i32
      %207 = arith.addi %205, %c0_i32_53 : i32
      %208 = arith.cmpi sge, %207, %200 : i32
      %209 = arith.cmpi slt, %207, %204 : i32
      %210 = arith.andi %208, %209 : i1
      %211 = arith.addi %8, %207 : i32
      %212 = arith.index_cast %211 : i32 to index
      %c0_54 = arith.constant 0 : index
      %c0_55 = arith.constant 0 : index
      %213 = vector.load %arg4[%212, %c0_54, %c0_55] : memref<32x16x128xf32, #tpu.memory_space<vmem>>, vector<1x16x128xf32>
      %214 = vector.shape_cast %213 : vector<1x16x128xf32> to vector<16x128xf32>
      %215 = vector.broadcast %cst : f32 to vector<16x128xf32>
      %216 = arith.select %210, %214, %215 : vector<16x128xf32>
      %217 = arith.maximumf %206, %216 : vector<16x128xf32>
      %c1_i32_56 = arith.constant 1 : i32
      %218 = arith.addi %205, %c1_i32_56 : i32
      %219 = arith.cmpi sge, %218, %200 : i32
      %220 = arith.cmpi slt, %218, %204 : i32
      %221 = arith.andi %219, %220 : i1
      %222 = arith.addi %8, %218 : i32
      %223 = arith.index_cast %222 : i32 to index
      %c0_57 = arith.constant 0 : index
      %c0_58 = arith.constant 0 : index
      %224 = vector.load %arg4[%223, %c0_57, %c0_58] : memref<32x16x128xf32, #tpu.memory_space<vmem>>, vector<1x16x128xf32>
      %225 = vector.shape_cast %224 : vector<1x16x128xf32> to vector<16x128xf32>
      %226 = vector.broadcast %cst : f32 to vector<16x128xf32>
      %227 = arith.select %221, %225, %226 : vector<16x128xf32>
      %228 = arith.maximumf %217, %227 : vector<16x128xf32>
      %c2_i32_59 = arith.constant 2 : i32
      %229 = arith.addi %205, %c2_i32_59 : i32
      %230 = arith.cmpi sge, %229, %200 : i32
      %231 = arith.cmpi slt, %229, %204 : i32
      %232 = arith.andi %230, %231 : i1
      %233 = arith.addi %8, %229 : i32
      %234 = arith.index_cast %233 : i32 to index
      %c0_60 = arith.constant 0 : index
      %c0_61 = arith.constant 0 : index
      %235 = vector.load %arg4[%234, %c0_60, %c0_61] : memref<32x16x128xf32, #tpu.memory_space<vmem>>, vector<1x16x128xf32>
      %236 = vector.shape_cast %235 : vector<1x16x128xf32> to vector<16x128xf32>
      %237 = vector.broadcast %cst : f32 to vector<16x128xf32>
      %238 = arith.select %232, %236, %237 : vector<16x128xf32>
      %239 = arith.maximumf %228, %238 : vector<16x128xf32>
      %c3_i32_62 = arith.constant 3 : i32
      %240 = arith.addi %205, %c3_i32_62 : i32
      %241 = arith.cmpi sge, %240, %200 : i32
      %242 = arith.cmpi slt, %240, %204 : i32
      %243 = arith.andi %241, %242 : i1
      %244 = arith.addi %8, %240 : i32
      %245 = arith.index_cast %244 : i32 to index
      %c0_63 = arith.constant 0 : index
      %c0_64 = arith.constant 0 : index
      %246 = vector.load %arg4[%245, %c0_63, %c0_64] : memref<32x16x128xf32, #tpu.memory_space<vmem>>, vector<1x16x128xf32>
      %247 = vector.shape_cast %246 : vector<1x16x128xf32> to vector<16x128xf32>
      %248 = vector.broadcast %cst : f32 to vector<16x128xf32>
      %249 = arith.select %243, %247, %248 : vector<16x128xf32>
      %250 = arith.maximumf %239, %249 : vector<16x128xf32>
      %c4_i32_65 = arith.constant 4 : i32
      %251 = arith.addi %205, %c4_i32_65 : i32
      %252 = arith.cmpi sge, %251, %200 : i32
      %253 = arith.cmpi slt, %251, %204 : i32
      %254 = arith.andi %252, %253 : i1
      %255 = arith.addi %8, %251 : i32
      %256 = arith.index_cast %255 : i32 to index
      %c0_66 = arith.constant 0 : index
      %c0_67 = arith.constant 0 : index
      %257 = vector.load %arg4[%256, %c0_66, %c0_67] : memref<32x16x128xf32, #tpu.memory_space<vmem>>, vector<1x16x128xf32>
      %258 = vector.shape_cast %257 : vector<1x16x128xf32> to vector<16x128xf32>
      %259 = vector.broadcast %cst : f32 to vector<16x128xf32>
      %260 = arith.select %254, %258, %259 : vector<16x128xf32>
      %261 = arith.maximumf %250, %260 : vector<16x128xf32>
      %c5_i32_68 = arith.constant 5 : i32
      %262 = arith.addi %205, %c5_i32_68 : i32
      %263 = arith.cmpi sge, %262, %200 : i32
      %264 = arith.cmpi slt, %262, %204 : i32
      %265 = arith.andi %263, %264 : i1
      %266 = arith.addi %8, %262 : i32
      %267 = arith.index_cast %266 : i32 to index
      %c0_69 = arith.constant 0 : index
      %c0_70 = arith.constant 0 : index
      %268 = vector.load %arg4[%267, %c0_69, %c0_70] : memref<32x16x128xf32, #tpu.memory_space<vmem>>, vector<1x16x128xf32>
      %269 = vector.shape_cast %268 : vector<1x16x128xf32> to vector<16x128xf32>
      %270 = vector.broadcast %cst : f32 to vector<16x128xf32>
      %271 = arith.select %265, %269, %270 : vector<16x128xf32>
      %272 = arith.maximumf %261, %271 : vector<16x128xf32>
      %c6_i32_71 = arith.constant 6 : i32
      %273 = arith.addi %205, %c6_i32_71 : i32
      %274 = arith.cmpi sge, %273, %200 : i32
      %275 = arith.cmpi slt, %273, %204 : i32
      %276 = arith.andi %274, %275 : i1
      %277 = arith.addi %8, %273 : i32
      %278 = arith.index_cast %277 : i32 to index
      %c0_72 = arith.constant 0 : index
      %c0_73 = arith.constant 0 : index
      %279 = vector.load %arg4[%278, %c0_72, %c0_73] : memref<32x16x128xf32, #tpu.memory_space<vmem>>, vector<1x16x128xf32>
      %280 = vector.shape_cast %279 : vector<1x16x128xf32> to vector<16x128xf32>
      %281 = vector.broadcast %cst : f32 to vector<16x128xf32>
      %282 = arith.select %276, %280, %281 : vector<16x128xf32>
      %283 = arith.maximumf %272, %282 : vector<16x128xf32>
      %c7_i32_74 = arith.constant 7 : i32
      %c8_i32_75 = arith.constant 8 : i32
      %284 = arith.addi %10, %c8_i32_75 : i32
      %c0_i32_76 = arith.constant 0 : i32
      %285 = arith.addi %284, %c0_i32_76 : i32
      %286 = arith.index_cast %285 : i32 to index
      %287 = memref.load %arg3[%286] : memref<256xi32, #tpu.memory_space<smem>>
      %c12_i32_77 = arith.constant 12 : i32
      %288 = arith.addi %10, %c12_i32_77 : i32
      %c0_i32_78 = arith.constant 0 : i32
      %289 = arith.addi %288, %c0_i32_78 : i32
      %290 = arith.index_cast %289 : i32 to index
      %291 = memref.load %arg3[%290] : memref<256xi32, #tpu.memory_space<smem>>
      %292 = vector.broadcast %287 : i32 to vector<16x1xi32>
      %293 = arith.cmpi sge, %0, %292 : vector<16x1xi32>
      %294 = vector.broadcast %291 : i32 to vector<16x1xi32>
      %295 = arith.cmpi slt, %0, %294 : vector<16x1xi32>
      %296 = arith.andi %293, %295 : vector<16x1xi1>
      %297 = vector.shape_cast %296 : vector<16x1xi1> to vector<16x1xi1>
      %298 = vector.broadcast %297 : vector<16x1xi1> to vector<16x128xi1>
      %299 = vector.broadcast %cst : f32 to vector<16x128xf32>
      %300 = arith.select %298, %283, %299 : vector<16x128xi1>, vector<16x128xf32>
      %cst_79 = arith.constant dense<0xFF800000> : vector<128xf32>
      %301 = vector.multi_reduction <maximumf>, %300, %cst_79 [0] : vector<16x128xf32> to vector<128xf32>
      %302 = vector.shape_cast %301 : vector<128xf32> to vector<1x128xf32>
      %303 = arith.cmpi sgt, %204, %200 : i32
      %304 = arith.cmpi sgt, %291, %287 : i32
      %305 = arith.andi %303, %304 : i1
      %cst_80 = arith.constant 0.000000e+00 : f32
      %306 = vector.broadcast %cst_80 : f32 to vector<1x128xf32>
      %307 = arith.select %305, %302, %306 : vector<1x128xf32>
      %308 = arith.addf %197, %307 : vector<1x128xf32>
      %c8_i32_81 = arith.constant 8 : i32
      %309 = arith.addi %10, %c8_i32_81 : i32
      %c1_i32_82 = arith.constant 1 : i32
      %310 = arith.addi %309, %c1_i32_82 : i32
      %311 = arith.index_cast %310 : i32 to index
      %312 = memref.load %arg3[%311] : memref<256xi32, #tpu.memory_space<smem>>
      %c12_i32_83 = arith.constant 12 : i32
      %313 = arith.addi %10, %c12_i32_83 : i32
      %c1_i32_84 = arith.constant 1 : i32
      %314 = arith.addi %313, %c1_i32_84 : i32
      %315 = arith.index_cast %314 : i32 to index
      %316 = memref.load %arg3[%315] : memref<256xi32, #tpu.memory_space<smem>>
      %317 = vector.broadcast %312 : i32 to vector<16x1xi32>
      %318 = arith.cmpi sge, %0, %317 : vector<16x1xi32>
      %319 = vector.broadcast %316 : i32 to vector<16x1xi32>
      %320 = arith.cmpi slt, %0, %319 : vector<16x1xi32>
      %321 = arith.andi %318, %320 : vector<16x1xi1>
      %322 = vector.shape_cast %321 : vector<16x1xi1> to vector<16x1xi1>
      %323 = vector.broadcast %322 : vector<16x1xi1> to vector<16x128xi1>
      %324 = vector.broadcast %cst : f32 to vector<16x128xf32>
      %325 = arith.select %323, %283, %324 : vector<16x128xi1>, vector<16x128xf32>
      %cst_85 = arith.constant dense<0xFF800000> : vector<128xf32>
      %326 = vector.multi_reduction <maximumf>, %325, %cst_85 [0] : vector<16x128xf32> to vector<128xf32>
      %327 = vector.shape_cast %326 : vector<128xf32> to vector<1x128xf32>
      %328 = arith.cmpi sgt, %204, %200 : i32
      %329 = arith.cmpi sgt, %316, %312 : i32
      %330 = arith.andi %328, %329 : i1
      %cst_86 = arith.constant 0.000000e+00 : f32
      %331 = vector.broadcast %cst_86 : f32 to vector<1x128xf32>
      %332 = arith.select %330, %327, %331 : vector<1x128xf32>
      %333 = arith.addf %308, %332 : vector<1x128xf32>
      %c8_i32_87 = arith.constant 8 : i32
      %334 = arith.addi %10, %c8_i32_87 : i32
      %c2_i32_88 = arith.constant 2 : i32
      %335 = arith.addi %334, %c2_i32_88 : i32
      %336 = arith.index_cast %335 : i32 to index
      %337 = memref.load %arg3[%336] : memref<256xi32, #tpu.memory_space<smem>>
      %c12_i32_89 = arith.constant 12 : i32
      %338 = arith.addi %10, %c12_i32_89 : i32
      %c2_i32_90 = arith.constant 2 : i32
      %339 = arith.addi %338, %c2_i32_90 : i32
      %340 = arith.index_cast %339 : i32 to index
      %341 = memref.load %arg3[%340] : memref<256xi32, #tpu.memory_space<smem>>
      %342 = vector.broadcast %337 : i32 to vector<16x1xi32>
      %343 = arith.cmpi sge, %0, %342 : vector<16x1xi32>
      %344 = vector.broadcast %341 : i32 to vector<16x1xi32>
      %345 = arith.cmpi slt, %0, %344 : vector<16x1xi32>
      %346 = arith.andi %343, %345 : vector<16x1xi1>
      %347 = vector.shape_cast %346 : vector<16x1xi1> to vector<16x1xi1>
      %348 = vector.broadcast %347 : vector<16x1xi1> to vector<16x128xi1>
      %349 = vector.broadcast %cst : f32 to vector<16x128xf32>
      %350 = arith.select %348, %283, %349 : vector<16x128xi1>, vector<16x128xf32>
      %cst_91 = arith.constant dense<0xFF800000> : vector<128xf32>
      %351 = vector.multi_reduction <maximumf>, %350, %cst_91 [0] : vector<16x128xf32> to vector<128xf32>
      %352 = vector.shape_cast %351 : vector<128xf32> to vector<1x128xf32>
      %353 = arith.cmpi sgt, %204, %200 : i32
      %354 = arith.cmpi sgt, %341, %337 : i32
      %355 = arith.andi %353, %354 : i1
      %cst_92 = arith.constant 0.000000e+00 : f32
      %356 = vector.broadcast %cst_92 : f32 to vector<1x128xf32>
      %357 = arith.select %355, %352, %356 : vector<1x128xf32>
      %358 = arith.addf %333, %357 : vector<1x128xf32>
      %c8_i32_93 = arith.constant 8 : i32
      %359 = arith.addi %10, %c8_i32_93 : i32
      %c3_i32_94 = arith.constant 3 : i32
      %360 = arith.addi %359, %c3_i32_94 : i32
      %361 = arith.index_cast %360 : i32 to index
      %362 = memref.load %arg3[%361] : memref<256xi32, #tpu.memory_space<smem>>
      %c12_i32_95 = arith.constant 12 : i32
      %363 = arith.addi %10, %c12_i32_95 : i32
      %c3_i32_96 = arith.constant 3 : i32
      %364 = arith.addi %363, %c3_i32_96 : i32
      %365 = arith.index_cast %364 : i32 to index
      %366 = memref.load %arg3[%365] : memref<256xi32, #tpu.memory_space<smem>>
      %367 = vector.broadcast %362 : i32 to vector<16x1xi32>
      %368 = arith.cmpi sge, %0, %367 : vector<16x1xi32>
      %369 = vector.broadcast %366 : i32 to vector<16x1xi32>
      %370 = arith.cmpi slt, %0, %369 : vector<16x1xi32>
      %371 = arith.andi %368, %370 : vector<16x1xi1>
      %372 = vector.shape_cast %371 : vector<16x1xi1> to vector<16x1xi1>
      %373 = vector.broadcast %372 : vector<16x1xi1> to vector<16x128xi1>
      %374 = vector.broadcast %cst : f32 to vector<16x128xf32>
      %375 = arith.select %373, %283, %374 : vector<16x128xi1>, vector<16x128xf32>
      %cst_97 = arith.constant dense<0xFF800000> : vector<128xf32>
      %376 = vector.multi_reduction <maximumf>, %375, %cst_97 [0] : vector<16x128xf32> to vector<128xf32>
      %377 = vector.shape_cast %376 : vector<128xf32> to vector<1x128xf32>
      %378 = arith.cmpi sgt, %204, %200 : i32
      %379 = arith.cmpi sgt, %366, %362 : i32
      %380 = arith.andi %378, %379 : i1
      %cst_98 = arith.constant 0.000000e+00 : f32
      %381 = vector.broadcast %cst_98 : f32 to vector<1x128xf32>
      %382 = arith.select %380, %377, %381 : vector<1x128xf32>
      %383 = arith.addf %358, %382 : vector<1x128xf32>
      %c2_i32_99 = arith.constant 2 : i32
      %384 = arith.addi %10, %c2_i32_99 : i32
      %385 = arith.index_cast %384 : i32 to index
      %386 = memref.load %arg3[%385] : memref<256xi32, #tpu.memory_space<smem>>
      %c4_i32_100 = arith.constant 4 : i32
      %387 = arith.addi %10, %c4_i32_100 : i32
      %c2_i32_101 = arith.constant 2 : i32
      %388 = arith.addi %387, %c2_i32_101 : i32
      %389 = arith.index_cast %388 : i32 to index
      %390 = memref.load %arg3[%389] : memref<256xi32, #tpu.memory_space<smem>>
      %c9_i32_102 = arith.constant 9 : i32
      %391 = arith.minsi %386, %c9_i32_102 : i32
      %392 = vector.broadcast %cst : f32 to vector<16x128xf32>
      %c0_i32_103 = arith.constant 0 : i32
      %393 = arith.addi %391, %c0_i32_103 : i32
      %394 = arith.cmpi sge, %393, %386 : i32
      %395 = arith.cmpi slt, %393, %390 : i32
      %396 = arith.andi %394, %395 : i1
      %397 = arith.addi %8, %393 : i32
      %398 = arith.index_cast %397 : i32 to index
      %c0_104 = arith.constant 0 : index
      %c0_105 = arith.constant 0 : index
      %399 = vector.load %arg4[%398, %c0_104, %c0_105] : memref<32x16x128xf32, #tpu.memory_space<vmem>>, vector<1x16x128xf32>
      %400 = vector.shape_cast %399 : vector<1x16x128xf32> to vector<16x128xf32>
      %401 = vector.broadcast %cst : f32 to vector<16x128xf32>
      %402 = arith.select %396, %400, %401 : vector<16x128xf32>
      %403 = arith.maximumf %392, %402 : vector<16x128xf32>
      %c1_i32_106 = arith.constant 1 : i32
      %404 = arith.addi %391, %c1_i32_106 : i32
      %405 = arith.cmpi sge, %404, %386 : i32
      %406 = arith.cmpi slt, %404, %390 : i32
      %407 = arith.andi %405, %406 : i1
      %408 = arith.addi %8, %404 : i32
      %409 = arith.index_cast %408 : i32 to index
      %c0_107 = arith.constant 0 : index
      %c0_108 = arith.constant 0 : index
      %410 = vector.load %arg4[%409, %c0_107, %c0_108] : memref<32x16x128xf32, #tpu.memory_space<vmem>>, vector<1x16x128xf32>
      %411 = vector.shape_cast %410 : vector<1x16x128xf32> to vector<16x128xf32>
      %412 = vector.broadcast %cst : f32 to vector<16x128xf32>
      %413 = arith.select %407, %411, %412 : vector<16x128xf32>
      %414 = arith.maximumf %403, %413 : vector<16x128xf32>
      %c2_i32_109 = arith.constant 2 : i32
      %415 = arith.addi %391, %c2_i32_109 : i32
      %416 = arith.cmpi sge, %415, %386 : i32
      %417 = arith.cmpi slt, %415, %390 : i32
      %418 = arith.andi %416, %417 : i1
      %419 = arith.addi %8, %415 : i32
      %420 = arith.index_cast %419 : i32 to index
      %c0_110 = arith.constant 0 : index
      %c0_111 = arith.constant 0 : index
      %421 = vector.load %arg4[%420, %c0_110, %c0_111] : memref<32x16x128xf32, #tpu.memory_space<vmem>>, vector<1x16x128xf32>
      %422 = vector.shape_cast %421 : vector<1x16x128xf32> to vector<16x128xf32>
      %423 = vector.broadcast %cst : f32 to vector<16x128xf32>
      %424 = arith.select %418, %422, %423 : vector<16x128xf32>
      %425 = arith.maximumf %414, %424 : vector<16x128xf32>
      %c3_i32_112 = arith.constant 3 : i32
      %426 = arith.addi %391, %c3_i32_112 : i32
      %427 = arith.cmpi sge, %426, %386 : i32
      %428 = arith.cmpi slt, %426, %390 : i32
      %429 = arith.andi %427, %428 : i1
      %430 = arith.addi %8, %426 : i32
      %431 = arith.index_cast %430 : i32 to index
      %c0_113 = arith.constant 0 : index
      %c0_114 = arith.constant 0 : index
      %432 = vector.load %arg4[%431, %c0_113, %c0_114] : memref<32x16x128xf32, #tpu.memory_space<vmem>>, vector<1x16x128xf32>
      %433 = vector.shape_cast %432 : vector<1x16x128xf32> to vector<16x128xf32>
      %434 = vector.broadcast %cst : f32 to vector<16x128xf32>
      %435 = arith.select %429, %433, %434 : vector<16x128xf32>
      %436 = arith.maximumf %425, %435 : vector<16x128xf32>
      %c4_i32_115 = arith.constant 4 : i32
      %437 = arith.addi %391, %c4_i32_115 : i32
      %438 = arith.cmpi sge, %437, %386 : i32
      %439 = arith.cmpi slt, %437, %390 : i32
      %440 = arith.andi %438, %439 : i1
      %441 = arith.addi %8, %437 : i32
      %442 = arith.index_cast %441 : i32 to index
      %c0_116 = arith.constant 0 : index
      %c0_117 = arith.constant 0 : index
      %443 = vector.load %arg4[%442, %c0_116, %c0_117] : memref<32x16x128xf32, #tpu.memory_space<vmem>>, vector<1x16x128xf32>
      %444 = vector.shape_cast %443 : vector<1x16x128xf32> to vector<16x128xf32>
      %445 = vector.broadcast %cst : f32 to vector<16x128xf32>
      %446 = arith.select %440, %444, %445 : vector<16x128xf32>
      %447 = arith.maximumf %436, %446 : vector<16x128xf32>
      %c5_i32_118 = arith.constant 5 : i32
      %448 = arith.addi %391, %c5_i32_118 : i32
      %449 = arith.cmpi sge, %448, %386 : i32
      %450 = arith.cmpi slt, %448, %390 : i32
      %451 = arith.andi %449, %450 : i1
      %452 = arith.addi %8, %448 : i32
      %453 = arith.index_cast %452 : i32 to index
      %c0_119 = arith.constant 0 : index
      %c0_120 = arith.constant 0 : index
      %454 = vector.load %arg4[%453, %c0_119, %c0_120] : memref<32x16x128xf32, #tpu.memory_space<vmem>>, vector<1x16x128xf32>
      %455 = vector.shape_cast %454 : vector<1x16x128xf32> to vector<16x128xf32>
      %456 = vector.broadcast %cst : f32 to vector<16x128xf32>
      %457 = arith.select %451, %455, %456 : vector<16x128xf32>
      %458 = arith.maximumf %447, %457 : vector<16x128xf32>
      %c6_i32_121 = arith.constant 6 : i32
      %459 = arith.addi %391, %c6_i32_121 : i32
      %460 = arith.cmpi sge, %459, %386 : i32
      %461 = arith.cmpi slt, %459, %390 : i32
      %462 = arith.andi %460, %461 : i1
      %463 = arith.addi %8, %459 : i32
      %464 = arith.index_cast %463 : i32 to index
      %c0_122 = arith.constant 0 : index
      %c0_123 = arith.constant 0 : index
      %465 = vector.load %arg4[%464, %c0_122, %c0_123] : memref<32x16x128xf32, #tpu.memory_space<vmem>>, vector<1x16x128xf32>
      %466 = vector.shape_cast %465 : vector<1x16x128xf32> to vector<16x128xf32>
      %467 = vector.broadcast %cst : f32 to vector<16x128xf32>
      %468 = arith.select %462, %466, %467 : vector<16x128xf32>
      %469 = arith.maximumf %458, %468 : vector<16x128xf32>
      %c7_i32_124 = arith.constant 7 : i32
      %c8_i32_125 = arith.constant 8 : i32
      %470 = arith.addi %10, %c8_i32_125 : i32
      %c0_i32_126 = arith.constant 0 : i32
      %471 = arith.addi %470, %c0_i32_126 : i32
      %472 = arith.index_cast %471 : i32 to index
      %473 = memref.load %arg3[%472] : memref<256xi32, #tpu.memory_space<smem>>
      %c12_i32_127 = arith.constant 12 : i32
      %474 = arith.addi %10, %c12_i32_127 : i32
      %c0_i32_128 = arith.constant 0 : i32
      %475 = arith.addi %474, %c0_i32_128 : i32
      %476 = arith.index_cast %475 : i32 to index
      %477 = memref.load %arg3[%476] : memref<256xi32, #tpu.memory_space<smem>>
      %478 = vector.broadcast %473 : i32 to vector<16x1xi32>
      %479 = arith.cmpi sge, %0, %478 : vector<16x1xi32>
      %480 = vector.broadcast %477 : i32 to vector<16x1xi32>
      %481 = arith.cmpi slt, %0, %480 : vector<16x1xi32>
      %482 = arith.andi %479, %481 : vector<16x1xi1>
      %483 = vector.shape_cast %482 : vector<16x1xi1> to vector<16x1xi1>
      %484 = vector.broadcast %483 : vector<16x1xi1> to vector<16x128xi1>
      %485 = vector.broadcast %cst : f32 to vector<16x128xf32>
      %486 = arith.select %484, %469, %485 : vector<16x128xi1>, vector<16x128xf32>
      %cst_129 = arith.constant dense<0xFF800000> : vector<128xf32>
      %487 = vector.multi_reduction <maximumf>, %486, %cst_129 [0] : vector<16x128xf32> to vector<128xf32>
      %488 = vector.shape_cast %487 : vector<128xf32> to vector<1x128xf32>
      %489 = arith.cmpi sgt, %390, %386 : i32
      %490 = arith.cmpi sgt, %477, %473 : i32
      %491 = arith.andi %489, %490 : i1
      %cst_130 = arith.constant 0.000000e+00 : f32
      %492 = vector.broadcast %cst_130 : f32 to vector<1x128xf32>
      %493 = arith.select %491, %488, %492 : vector<1x128xf32>
      %494 = arith.addf %383, %493 : vector<1x128xf32>
      %c8_i32_131 = arith.constant 8 : i32
      %495 = arith.addi %10, %c8_i32_131 : i32
      %c1_i32_132 = arith.constant 1 : i32
      %496 = arith.addi %495, %c1_i32_132 : i32
      %497 = arith.index_cast %496 : i32 to index
      %498 = memref.load %arg3[%497] : memref<256xi32, #tpu.memory_space<smem>>
      %c12_i32_133 = arith.constant 12 : i32
      %499 = arith.addi %10, %c12_i32_133 : i32
      %c1_i32_134 = arith.constant 1 : i32
      %500 = arith.addi %499, %c1_i32_134 : i32
      %501 = arith.index_cast %500 : i32 to index
      %502 = memref.load %arg3[%501] : memref<256xi32, #tpu.memory_space<smem>>
      %503 = vector.broadcast %498 : i32 to vector<16x1xi32>
      %504 = arith.cmpi sge, %0, %503 : vector<16x1xi32>
      %505 = vector.broadcast %502 : i32 to vector<16x1xi32>
      %506 = arith.cmpi slt, %0, %505 : vector<16x1xi32>
      %507 = arith.andi %504, %506 : vector<16x1xi1>
      %508 = vector.shape_cast %507 : vector<16x1xi1> to vector<16x1xi1>
      %509 = vector.broadcast %508 : vector<16x1xi1> to vector<16x128xi1>
      %510 = vector.broadcast %cst : f32 to vector<16x128xf32>
      %511 = arith.select %509, %469, %510 : vector<16x128xi1>, vector<16x128xf32>
      %cst_135 = arith.constant dense<0xFF800000> : vector<128xf32>
      %512 = vector.multi_reduction <maximumf>, %511, %cst_135 [0] : vector<16x128xf32> to vector<128xf32>
      %513 = vector.shape_cast %512 : vector<128xf32> to vector<1x128xf32>
      %514 = arith.cmpi sgt, %390, %386 : i32
      %515 = arith.cmpi sgt, %502, %498 : i32
      %516 = arith.andi %514, %515 : i1
      %cst_136 = arith.constant 0.000000e+00 : f32
      %517 = vector.broadcast %cst_136 : f32 to vector<1x128xf32>
      %518 = arith.select %516, %513, %517 : vector<1x128xf32>
      %519 = arith.addf %494, %518 : vector<1x128xf32>
      %c8_i32_137 = arith.constant 8 : i32
      %520 = arith.addi %10, %c8_i32_137 : i32
      %c2_i32_138 = arith.constant 2 : i32
      %521 = arith.addi %520, %c2_i32_138 : i32
      %522 = arith.index_cast %521 : i32 to index
      %523 = memref.load %arg3[%522] : memref<256xi32, #tpu.memory_space<smem>>
      %c12_i32_139 = arith.constant 12 : i32
      %524 = arith.addi %10, %c12_i32_139 : i32
      %c2_i32_140 = arith.constant 2 : i32
      %525 = arith.addi %524, %c2_i32_140 : i32
      %526 = arith.index_cast %525 : i32 to index
      %527 = memref.load %arg3[%526] : memref<256xi32, #tpu.memory_space<smem>>
      %528 = vector.broadcast %523 : i32 to vector<16x1xi32>
      %529 = arith.cmpi sge, %0, %528 : vector<16x1xi32>
      %530 = vector.broadcast %527 : i32 to vector<16x1xi32>
      %531 = arith.cmpi slt, %0, %530 : vector<16x1xi32>
      %532 = arith.andi %529, %531 : vector<16x1xi1>
      %533 = vector.shape_cast %532 : vector<16x1xi1> to vector<16x1xi1>
      %534 = vector.broadcast %533 : vector<16x1xi1> to vector<16x128xi1>
      %535 = vector.broadcast %cst : f32 to vector<16x128xf32>
      %536 = arith.select %534, %469, %535 : vector<16x128xi1>, vector<16x128xf32>
      %cst_141 = arith.constant dense<0xFF800000> : vector<128xf32>
      %537 = vector.multi_reduction <maximumf>, %536, %cst_141 [0] : vector<16x128xf32> to vector<128xf32>
      %538 = vector.shape_cast %537 : vector<128xf32> to vector<1x128xf32>
      %539 = arith.cmpi sgt, %390, %386 : i32
      %540 = arith.cmpi sgt, %527, %523 : i32
      %541 = arith.andi %539, %540 : i1
      %cst_142 = arith.constant 0.000000e+00 : f32
      %542 = vector.broadcast %cst_142 : f32 to vector<1x128xf32>
      %543 = arith.select %541, %538, %542 : vector<1x128xf32>
      %544 = arith.addf %519, %543 : vector<1x128xf32>
      %c8_i32_143 = arith.constant 8 : i32
      %545 = arith.addi %10, %c8_i32_143 : i32
      %c3_i32_144 = arith.constant 3 : i32
      %546 = arith.addi %545, %c3_i32_144 : i32
      %547 = arith.index_cast %546 : i32 to index
      %548 = memref.load %arg3[%547] : memref<256xi32, #tpu.memory_space<smem>>
      %c12_i32_145 = arith.constant 12 : i32
      %549 = arith.addi %10, %c12_i32_145 : i32
      %c3_i32_146 = arith.constant 3 : i32
      %550 = arith.addi %549, %c3_i32_146 : i32
      %551 = arith.index_cast %550 : i32 to index
      %552 = memref.load %arg3[%551] : memref<256xi32, #tpu.memory_space<smem>>
      %553 = vector.broadcast %548 : i32 to vector<16x1xi32>
      %554 = arith.cmpi sge, %0, %553 : vector<16x1xi32>
      %555 = vector.broadcast %552 : i32 to vector<16x1xi32>
      %556 = arith.cmpi slt, %0, %555 : vector<16x1xi32>
      %557 = arith.andi %554, %556 : vector<16x1xi1>
      %558 = vector.shape_cast %557 : vector<16x1xi1> to vector<16x1xi1>
      %559 = vector.broadcast %558 : vector<16x1xi1> to vector<16x128xi1>
      %560 = vector.broadcast %cst : f32 to vector<16x128xf32>
      %561 = arith.select %559, %469, %560 : vector<16x128xi1>, vector<16x128xf32>
      %cst_147 = arith.constant dense<0xFF800000> : vector<128xf32>
      %562 = vector.multi_reduction <maximumf>, %561, %cst_147 [0] : vector<16x128xf32> to vector<128xf32>
      %563 = vector.shape_cast %562 : vector<128xf32> to vector<1x128xf32>
      %564 = arith.cmpi sgt, %390, %386 : i32
      %565 = arith.cmpi sgt, %552, %548 : i32
      %566 = arith.andi %564, %565 : i1
      %cst_148 = arith.constant 0.000000e+00 : f32
      %567 = vector.broadcast %cst_148 : f32 to vector<1x128xf32>
      %568 = arith.select %566, %563, %567 : vector<1x128xf32>
      %569 = arith.addf %544, %568 : vector<1x128xf32>
      %c3_i32_149 = arith.constant 3 : i32
      %570 = arith.addi %10, %c3_i32_149 : i32
      %571 = arith.index_cast %570 : i32 to index
      %572 = memref.load %arg3[%571] : memref<256xi32, #tpu.memory_space<smem>>
      %c4_i32_150 = arith.constant 4 : i32
      %573 = arith.addi %10, %c4_i32_150 : i32
      %c3_i32_151 = arith.constant 3 : i32
      %574 = arith.addi %573, %c3_i32_151 : i32
      %575 = arith.index_cast %574 : i32 to index
      %576 = memref.load %arg3[%575] : memref<256xi32, #tpu.memory_space<smem>>
      %c9_i32_152 = arith.constant 9 : i32
      %577 = arith.minsi %572, %c9_i32_152 : i32
      %578 = vector.broadcast %cst : f32 to vector<16x128xf32>
      %c0_i32_153 = arith.constant 0 : i32
      %579 = arith.addi %577, %c0_i32_153 : i32
      %580 = arith.cmpi sge, %579, %572 : i32
      %581 = arith.cmpi slt, %579, %576 : i32
      %582 = arith.andi %580, %581 : i1
      %583 = arith.addi %8, %579 : i32
      %584 = arith.index_cast %583 : i32 to index
      %c0_154 = arith.constant 0 : index
      %c0_155 = arith.constant 0 : index
      %585 = vector.load %arg4[%584, %c0_154, %c0_155] : memref<32x16x128xf32, #tpu.memory_space<vmem>>, vector<1x16x128xf32>
      %586 = vector.shape_cast %585 : vector<1x16x128xf32> to vector<16x128xf32>
      %587 = vector.broadcast %cst : f32 to vector<16x128xf32>
      %588 = arith.select %582, %586, %587 : vector<16x128xf32>
      %589 = arith.maximumf %578, %588 : vector<16x128xf32>
      %c1_i32_156 = arith.constant 1 : i32
      %590 = arith.addi %577, %c1_i32_156 : i32
      %591 = arith.cmpi sge, %590, %572 : i32
      %592 = arith.cmpi slt, %590, %576 : i32
      %593 = arith.andi %591, %592 : i1
      %594 = arith.addi %8, %590 : i32
      %595 = arith.index_cast %594 : i32 to index
      %c0_157 = arith.constant 0 : index
      %c0_158 = arith.constant 0 : index
      %596 = vector.load %arg4[%595, %c0_157, %c0_158] : memref<32x16x128xf32, #tpu.memory_space<vmem>>, vector<1x16x128xf32>
      %597 = vector.shape_cast %596 : vector<1x16x128xf32> to vector<16x128xf32>
      %598 = vector.broadcast %cst : f32 to vector<16x128xf32>
      %599 = arith.select %593, %597, %598 : vector<16x128xf32>
      %600 = arith.maximumf %589, %599 : vector<16x128xf32>
      %c2_i32_159 = arith.constant 2 : i32
      %601 = arith.addi %577, %c2_i32_159 : i32
      %602 = arith.cmpi sge, %601, %572 : i32
      %603 = arith.cmpi slt, %601, %576 : i32
      %604 = arith.andi %602, %603 : i1
      %605 = arith.addi %8, %601 : i32
      %606 = arith.index_cast %605 : i32 to index
      %c0_160 = arith.constant 0 : index
      %c0_161 = arith.constant 0 : index
      %607 = vector.load %arg4[%606, %c0_160, %c0_161] : memref<32x16x128xf32, #tpu.memory_space<vmem>>, vector<1x16x128xf32>
      %608 = vector.shape_cast %607 : vector<1x16x128xf32> to vector<16x128xf32>
      %609 = vector.broadcast %cst : f32 to vector<16x128xf32>
      %610 = arith.select %604, %608, %609 : vector<16x128xf32>
      %611 = arith.maximumf %600, %610 : vector<16x128xf32>
      %c3_i32_162 = arith.constant 3 : i32
      %612 = arith.addi %577, %c3_i32_162 : i32
      %613 = arith.cmpi sge, %612, %572 : i32
      %614 = arith.cmpi slt, %612, %576 : i32
      %615 = arith.andi %613, %614 : i1
      %616 = arith.addi %8, %612 : i32
      %617 = arith.index_cast %616 : i32 to index
      %c0_163 = arith.constant 0 : index
      %c0_164 = arith.constant 0 : index
      %618 = vector.load %arg4[%617, %c0_163, %c0_164] : memref<32x16x128xf32, #tpu.memory_space<vmem>>, vector<1x16x128xf32>
      %619 = vector.shape_cast %618 : vector<1x16x128xf32> to vector<16x128xf32>
      %620 = vector.broadcast %cst : f32 to vector<16x128xf32>
      %621 = arith.select %615, %619, %620 : vector<16x128xf32>
      %622 = arith.maximumf %611, %621 : vector<16x128xf32>
      %c4_i32_165 = arith.constant 4 : i32
      %623 = arith.addi %577, %c4_i32_165 : i32
      %624 = arith.cmpi sge, %623, %572 : i32
      %625 = arith.cmpi slt, %623, %576 : i32
      %626 = arith.andi %624, %625 : i1
      %627 = arith.addi %8, %623 : i32
      %628 = arith.index_cast %627 : i32 to index
      %c0_166 = arith.constant 0 : index
      %c0_167 = arith.constant 0 : index
      %629 = vector.load %arg4[%628, %c0_166, %c0_167] : memref<32x16x128xf32, #tpu.memory_space<vmem>>, vector<1x16x128xf32>
      %630 = vector.shape_cast %629 : vector<1x16x128xf32> to vector<16x128xf32>
      %631 = vector.broadcast %cst : f32 to vector<16x128xf32>
      %632 = arith.select %626, %630, %631 : vector<16x128xf32>
      %633 = arith.maximumf %622, %632 : vector<16x128xf32>
      %c5_i32_168 = arith.constant 5 : i32
      %634 = arith.addi %577, %c5_i32_168 : i32
      %635 = arith.cmpi sge, %634, %572 : i32
      %636 = arith.cmpi slt, %634, %576 : i32
      %637 = arith.andi %635, %636 : i1
      %638 = arith.addi %8, %634 : i32
      %639 = arith.index_cast %638 : i32 to index
      %c0_169 = arith.constant 0 : index
      %c0_170 = arith.constant 0 : index
      %640 = vector.load %arg4[%639, %c0_169, %c0_170] : memref<32x16x128xf32, #tpu.memory_space<vmem>>, vector<1x16x128xf32>
      %641 = vector.shape_cast %640 : vector<1x16x128xf32> to vector<16x128xf32>
      %642 = vector.broadcast %cst : f32 to vector<16x128xf32>
      %643 = arith.select %637, %641, %642 : vector<16x128xf32>
      %644 = arith.maximumf %633, %643 : vector<16x128xf32>
      %c6_i32_171 = arith.constant 6 : i32
      %645 = arith.addi %577, %c6_i32_171 : i32
      %646 = arith.cmpi sge, %645, %572 : i32
      %647 = arith.cmpi slt, %645, %576 : i32
      %648 = arith.andi %646, %647 : i1
      %649 = arith.addi %8, %645 : i32
      %650 = arith.index_cast %649 : i32 to index
      %c0_172 = arith.constant 0 : index
      %c0_173 = arith.constant 0 : index
      %651 = vector.load %arg4[%650, %c0_172, %c0_173] : memref<32x16x128xf32, #tpu.memory_space<vmem>>, vector<1x16x128xf32>
      %652 = vector.shape_cast %651 : vector<1x16x128xf32> to vector<16x128xf32>
      %653 = vector.broadcast %cst : f32 to vector<16x128xf32>
      %654 = arith.select %648, %652, %653 : vector<16x128xf32>
      %655 = arith.maximumf %644, %654 : vector<16x128xf32>
      %c7_i32_174 = arith.constant 7 : i32
      %c8_i32_175 = arith.constant 8 : i32
      %656 = arith.addi %10, %c8_i32_175 : i32
      %c0_i32_176 = arith.constant 0 : i32
      %657 = arith.addi %656, %c0_i32_176 : i32
      %658 = arith.index_cast %657 : i32 to index
      %659 = memref.load %arg3[%658] : memref<256xi32, #tpu.memory_space<smem>>
      %c12_i32_177 = arith.constant 12 : i32
      %660 = arith.addi %10, %c12_i32_177 : i32
      %c0_i32_178 = arith.constant 0 : i32
      %661 = arith.addi %660, %c0_i32_178 : i32
      %662 = arith.index_cast %661 : i32 to index
      %663 = memref.load %arg3[%662] : memref<256xi32, #tpu.memory_space<smem>>
      %664 = vector.broadcast %659 : i32 to vector<16x1xi32>
      %665 = arith.cmpi sge, %0, %664 : vector<16x1xi32>
      %666 = vector.broadcast %663 : i32 to vector<16x1xi32>
      %667 = arith.cmpi slt, %0, %666 : vector<16x1xi32>
      %668 = arith.andi %665, %667 : vector<16x1xi1>
      %669 = vector.shape_cast %668 : vector<16x1xi1> to vector<16x1xi1>
      %670 = vector.broadcast %669 : vector<16x1xi1> to vector<16x128xi1>
      %671 = vector.broadcast %cst : f32 to vector<16x128xf32>
      %672 = arith.select %670, %655, %671 : vector<16x128xi1>, vector<16x128xf32>
      %cst_179 = arith.constant dense<0xFF800000> : vector<128xf32>
      %673 = vector.multi_reduction <maximumf>, %672, %cst_179 [0] : vector<16x128xf32> to vector<128xf32>
      %674 = vector.shape_cast %673 : vector<128xf32> to vector<1x128xf32>
      %675 = arith.cmpi sgt, %576, %572 : i32
      %676 = arith.cmpi sgt, %663, %659 : i32
      %677 = arith.andi %675, %676 : i1
      %cst_180 = arith.constant 0.000000e+00 : f32
      %678 = vector.broadcast %cst_180 : f32 to vector<1x128xf32>
      %679 = arith.select %677, %674, %678 : vector<1x128xf32>
      %680 = arith.addf %569, %679 : vector<1x128xf32>
      %c8_i32_181 = arith.constant 8 : i32
      %681 = arith.addi %10, %c8_i32_181 : i32
      %c1_i32_182 = arith.constant 1 : i32
      %682 = arith.addi %681, %c1_i32_182 : i32
      %683 = arith.index_cast %682 : i32 to index
      %684 = memref.load %arg3[%683] : memref<256xi32, #tpu.memory_space<smem>>
      %c12_i32_183 = arith.constant 12 : i32
      %685 = arith.addi %10, %c12_i32_183 : i32
      %c1_i32_184 = arith.constant 1 : i32
      %686 = arith.addi %685, %c1_i32_184 : i32
      %687 = arith.index_cast %686 : i32 to index
      %688 = memref.load %arg3[%687] : memref<256xi32, #tpu.memory_space<smem>>
      %689 = vector.broadcast %684 : i32 to vector<16x1xi32>
      %690 = arith.cmpi sge, %0, %689 : vector<16x1xi32>
      %691 = vector.broadcast %688 : i32 to vector<16x1xi32>
      %692 = arith.cmpi slt, %0, %691 : vector<16x1xi32>
      %693 = arith.andi %690, %692 : vector<16x1xi1>
      %694 = vector.shape_cast %693 : vector<16x1xi1> to vector<16x1xi1>
      %695 = vector.broadcast %694 : vector<16x1xi1> to vector<16x128xi1>
      %696 = vector.broadcast %cst : f32 to vector<16x128xf32>
      %697 = arith.select %695, %655, %696 : vector<16x128xi1>, vector<16x128xf32>
      %cst_185 = arith.constant dense<0xFF800000> : vector<128xf32>
      %698 = vector.multi_reduction <maximumf>, %697, %cst_185 [0] : vector<16x128xf32> to vector<128xf32>
      %699 = vector.shape_cast %698 : vector<128xf32> to vector<1x128xf32>
      %700 = arith.cmpi sgt, %576, %572 : i32
      %701 = arith.cmpi sgt, %688, %684 : i32
      %702 = arith.andi %700, %701 : i1
      %cst_186 = arith.constant 0.000000e+00 : f32
      %703 = vector.broadcast %cst_186 : f32 to vector<1x128xf32>
      %704 = arith.select %702, %699, %703 : vector<1x128xf32>
      %705 = arith.addf %680, %704 : vector<1x128xf32>
      %c8_i32_187 = arith.constant 8 : i32
      %706 = arith.addi %10, %c8_i32_187 : i32
      %c2_i32_188 = arith.constant 2 : i32
      %707 = arith.addi %706, %c2_i32_188 : i32
      %708 = arith.index_cast %707 : i32 to index
      %709 = memref.load %arg3[%708] : memref<256xi32, #tpu.memory_space<smem>>
      %c12_i32_189 = arith.constant 12 : i32
      %710 = arith.addi %10, %c12_i32_189 : i32
      %c2_i32_190 = arith.constant 2 : i32
      %711 = arith.addi %710, %c2_i32_190 : i32
      %712 = arith.index_cast %711 : i32 to index
      %713 = memref.load %arg3[%712] : memref<256xi32, #tpu.memory_space<smem>>
      %714 = vector.broadcast %709 : i32 to vector<16x1xi32>
      %715 = arith.cmpi sge, %0, %714 : vector<16x1xi32>
      %716 = vector.broadcast %713 : i32 to vector<16x1xi32>
      %717 = arith.cmpi slt, %0, %716 : vector<16x1xi32>
      %718 = arith.andi %715, %717 : vector<16x1xi1>
      %719 = vector.shape_cast %718 : vector<16x1xi1> to vector<16x1xi1>
      %720 = vector.broadcast %719 : vector<16x1xi1> to vector<16x128xi1>
      %721 = vector.broadcast %cst : f32 to vector<16x128xf32>
      %722 = arith.select %720, %655, %721 : vector<16x128xi1>, vector<16x128xf32>
      %cst_191 = arith.constant dense<0xFF800000> : vector<128xf32>
      %723 = vector.multi_reduction <maximumf>, %722, %cst_191 [0] : vector<16x128xf32> to vector<128xf32>
      %724 = vector.shape_cast %723 : vector<128xf32> to vector<1x128xf32>
      %725 = arith.cmpi sgt, %576, %572 : i32
      %726 = arith.cmpi sgt, %713, %709 : i32
      %727 = arith.andi %725, %726 : i1
      %cst_192 = arith.constant 0.000000e+00 : f32
      %728 = vector.broadcast %cst_192 : f32 to vector<1x128xf32>
      %729 = arith.select %727, %724, %728 : vector<1x128xf32>
      %730 = arith.addf %705, %729 : vector<1x128xf32>
      %c8_i32_193 = arith.constant 8 : i32
      %731 = arith.addi %10, %c8_i32_193 : i32
      %c3_i32_194 = arith.constant 3 : i32
      %732 = arith.addi %731, %c3_i32_194 : i32
      %733 = arith.index_cast %732 : i32 to index
      %734 = memref.load %arg3[%733] : memref<256xi32, #tpu.memory_space<smem>>
      %c12_i32_195 = arith.constant 12 : i32
      %735 = arith.addi %10, %c12_i32_195 : i32
      %c3_i32_196 = arith.constant 3 : i32
      %736 = arith.addi %735, %c3_i32_196 : i32
      %737 = arith.index_cast %736 : i32 to index
      %738 = memref.load %arg3[%737] : memref<256xi32, #tpu.memory_space<smem>>
      %739 = vector.broadcast %734 : i32 to vector<16x1xi32>
      %740 = arith.cmpi sge, %0, %739 : vector<16x1xi32>
      %741 = vector.broadcast %738 : i32 to vector<16x1xi32>
      %742 = arith.cmpi slt, %0, %741 : vector<16x1xi32>
      %743 = arith.andi %740, %742 : vector<16x1xi1>
      %744 = vector.shape_cast %743 : vector<16x1xi1> to vector<16x1xi1>
      %745 = vector.broadcast %744 : vector<16x1xi1> to vector<16x128xi1>
      %746 = vector.broadcast %cst : f32 to vector<16x128xf32>
      %747 = arith.select %745, %655, %746 : vector<16x128xi1>, vector<16x128xf32>
      %cst_197 = arith.constant dense<0xFF800000> : vector<128xf32>
      %748 = vector.multi_reduction <maximumf>, %747, %cst_197 [0] : vector<16x128xf32> to vector<128xf32>
      %749 = vector.shape_cast %748 : vector<128xf32> to vector<1x128xf32>
      %750 = arith.cmpi sgt, %576, %572 : i32
      %751 = arith.cmpi sgt, %738, %734 : i32
      %752 = arith.andi %750, %751 : i1
      %cst_198 = arith.constant 0.000000e+00 : f32
      %753 = vector.broadcast %cst_198 : f32 to vector<1x128xf32>
      %754 = arith.select %752, %749, %753 : vector<1x128xf32>
      %755 = arith.addf %730, %754 : vector<1x128xf32>
      %756 = vector.broadcast %cst_0 : f32 to vector<1x128xf32>
      %757 = arith.mulf %755, %756 : vector<1x128xf32>
      %758 = arith.index_cast %3 : i32 to index
      %c0_199 = arith.constant 0 : index
      %759 = vector.load %arg5[%758, %c0_199] : memref<8x128xf32, #tpu.memory_space<vmem>>, vector<1x128xf32>
      tpu.vector_store %arg5[%758, %c0_199], %757 {strides = array<i32>} : memref<8x128xf32, #tpu.memory_space<vmem>>, vector<1x128xf32>,
    }
    %c8_i32_1 = arith.constant 8 : i32
    return
  }
  func.func @transform_0(%arg0: i32, %arg1: i32, %arg2: memref<16xi32, #tpu.memory_space<smem>>, %arg3: memref<256xi32, #tpu.memory_space<smem>>) -> (i32, i32, i32) {
    %c0_i32 = arith.constant 0 : i32
    %c0_i32_0 = arith.constant 0 : i32
    %c0_i32_1 = arith.constant 0 : i32
    return %c0_i32, %c0_i32_0, %arg0 : i32, i32, i32
  }
  func.func @transform_1(%arg0: i32, %arg1: i32, %arg2: memref<16xi32, #tpu.memory_space<smem>>, %arg3: memref<256xi32, #tpu.memory_space<smem>>) -> (i32, i32) {
    %c0_i32 = arith.constant 0 : i32
    return %arg1, %arg0 : i32, i32
  }
}

</mosaic_0001>

<bundles_post_ra>
// kernel: tpu_custom_call.1
= control target key start
LH: loop header
LB: loop body
LE: loop exit
PB: predicated region body
PF: predicated region fallthrough
CT: control target
= control target key end

     0   :  { %s1593_s18 = smov [#allocation3]   ;;  %s1594_s19 = smov [#allocation4]   ;;  %s2837_s0 = inlined_call_operand.hbm [shape: s32[16], index: 0, kind: input, shape index: {}]   ;;  %s2838_s2 = inlined_call_operand.hbm [shape: f32[32,16,128], index: 2, kind: input, shape index: {}]   ;;  %s2839_s3 = inlined_call_operand.hbm [shape: f32[16,128], index: 3, kind: output, shape index: {}]   ;;  %s2840_s1 = inlined_call_operand.hbm [shape: s32[256], index: 1, kind: input, shape index: {}]  }
   0x1   :  { %2861 = sst [smem:[#allocation24_spill]] %s2838_s2  ;;  %s9_s14 = sshll.u32 %s2837_s0, 4  ;;  %s10_s14 = int_to_ptr.hbm [resolvable:$true] %s9_s14 }
   0x2   :  { %2862 = sst [smem:[#allocation25_spill]] %s2839_s3  ;;  %s14_s17 = sshll.u32 %s2840_s1, 4  ;;  %s15_s17 = int_to_ptr.hbm [resolvable:$true] %s14_s17 }
   0x3   :  { %12 = dma.hbm_to_smem %s10_s14, 16, %s1593_s18, [#allocation2] }
   0x4   :  { %17 = dma.hbm_to_smem %s15_s17, 32, %s1594_s19, [#allocation2] }
   0x5   :  { %1555 = dma.done.wait [#allocation2], 48 }
   0x6   :  { %1556 = vsyncadd [#allocation2], 4294967248 }
   0x7   :  { %20 = sfence }
   0x8   :  { %21 = vsyncpa [#allocation6], 0 }
   0x9   :  { %22 = vsyncpa [#allocation7], 0 }
   0xa   :  { %24 = vsyncpa [#allocation7 + $0x1], 0  ;;  %s1624_s20 = smov 0   ;;  %s1626_s21 = smov 0  }
   0xb   :  { %s1628_s0 = smov 0   ;;  %s1630_s22 = smov 0  }
   0xc   :  { %s1632_s1 = smov 0   ;;  %s1634_s23 = smov 0  }
   0xd LB: > { %2863 = sst [smem:[#allocation12_spill]] %s1567_s20  ;;  %s1209_s24 = sadd.s32 4294967295, %s1587_s23   ;;  %s1587_s23 = sphi %s1634_s23, %s30_s23   ;;  %s1583_s1 = sphi %s1632_s1, %s3032_s1   ;;  %s1579_s22 = sphi %s1630_s22, %s3031_s22   ;;  %s1575_s0 = sphi %s1628_s0, %s3030_s0   ;;  %s1571_s21 = sphi %s1626_s21, %s3029_s21   ;;  %s1567_s20 = sphi %s1624_s20, %s3028_s20  }
   0xe   : > { %2864 = sst [smem:[#allocation13_spill]] %s1571_s21  ;;  %s1210_s25 = sadd.s32 4294967294, %s1587_s23  }
   0xf   : > { %2865 = sst [smem:[#allocation14_spill]] %s1575_s0  ;;  %s39_s26 = sadd.s32 1, %s1583_s1 }
  0x10   : > { %2866 = sst [smem:[#allocation15_spill]] %s1579_s22  ;;  %s77_s27 = sadd.s32 1, %s1575_s0 }
  0x11   : > { %2867 = sst [smem:[#allocation16_spill]] %s1583_s1  ;;  %p40_p0 = scmp.ge.s32.totalorder %s39_s26, 2 }
  0x12   : > { %2868 = sst [smem:[#allocation17_spill]] %s1587_s23  ;;  %p87_p1 = scmp.ne.s32.totalorder %s1575_s0, %s1571_s21 }
  0x13   : > { %p88_p2 = scmp.eq.s32.totalorder %s1209_s24, 1  ;;  %p93_p3 = scmp.ne.s32.totalorder %s1571_s21, %s1567_s20 }
  0x14   : > { %s3034_s26 = smov (%p40_p0, %s39_s26), 0  ;;  %p94_p5 = scmp.eq.s32.totalorder %s1210_s25, 1 }
  0x15   : > { %2869 = sst [smem:[#allocation18_spill]] %s3034_s26  ;;  %p1664_p4 = por %p88_p2, %p87_p1 }
  0x16   : > { %s72_s29 = ssub.s32 %s1583_s1, %s3034_s26  ;;  %p1211_p6 = scmp.ge.s32.totalorder %s1587_s23, 1 }
  0x17   : > { %s2870_s28 = scalar_select %p1664_p4, 1, 0 }
  0x18   : > { %p75_p7 = scmp.eq.s32.totalorder %s72_s29, 0  ;;  %p1671_p8 = por %p94_p5, %p93_p3 }
  0x19   : > { %2871 = sst [smem:[#allocation19_spill]] %s2870_s28  ;;  %p101_p9 = scmp.lt.s32.totalorder %s1587_s23, 3 }
  0x1a   : > { %s2872_s30 = scalar_select %p1671_p8, 1, 0 }
  0x1b   : > { %s1677_s4 = scalar_select %p75_p7, %s1575_s0, %s77_s27  }
  0x1c   : > { %2873 = sst [smem:[#allocation20_spill]] %s2872_s30  ;;  %p102_p10 = pnand %p1211_p6, %p101_p9 }
  0x1d   : > { %2874 = sst [smem:[#allocation21_spill]] %s1677_s4  ;;  %p1381_p11 = scmp.eq.s32.totalorder %s1209_s24, 0 }
  0x1e   : > { %s2875_s2 = sld [smem:[#allocation24_spill]]  ;;  %p1373_p12 = pneg %p102_p10 }
  0x1f   : > { %s1595_s8 = smov [#allocation5]   ;;  %s1596_s10 = smov 128  }
  0x20   : > { %s116_s9 = sshll.u32 %s1595_s8, 4  ;;  %p1374_p13 = pnand %p1381_p11, %p1373_p12  ;;  %s117_s9 = int_to_ptr.vmem [resolvable:$true] %s116_s9 }
  0x21   : > { %s1597_s11 = smov 8   ;;  %132 = sbr.rel (%p102_p10) target bundleno = 249 (0xf9), region = 24 }
  0x24   : > { %s114_s7 = sshll.u32 %s2875_s2, 4  ;;  %s115_s7 = int_to_ptr.hbm [resolvable:$true] %s114_s7 }
  0x25   : > { %1376 = dma.hbm_to_vmem [thread:$0]  (!%p1374_p13), %s115_s7, 8192, %s117_s9, [#allocation6], %s1596_s10, %s1596_s10, %s1597_s11  }
  0x26   : > { %1558 = dma.done.wait (%p1381_p11), [#allocation6], 8192  }
  0x27   : > { %1560 = vsyncadd (%p1381_p11), [#allocation6], 4294959104  ;;  %s2841_s12 = sand.u32 1, %s1571_s21   ;;  %v148_v0 = vlaneseq  ;;  %s1693_s15 = smov 0  }
  0x28   : > { %s1685_s13 = sshll.u32 %s2841_s12, 3 }
  0x29   : > { %2876 = sst [smem:[#allocation22_spill]] %s1685_s13  ;;  %v1687_v1 = vshrl.u32 %v148_v0, 7 }
  0x2b   : > { %v1690_v2 = vadd.s32 8, %v1687_v1 }
  0x2c LB: >> { %s2877_s22 = sld [smem:[#allocation15_spill]]  ;;  %s1591_s15 = sphi %s1693_s15, %s156_s15  }
  0x2d   : >> { %2878 = sst [smem:[#allocation23_spill]] %s1591_s15 }
  0x32   : >> { %s2842_s16 = sshll.u32 %s2877_s22, 3 }
  0x33   : >> { %s158_s17 = sadd.s32 %s1591_s15, %s2842_s16 }
  0x34   : >> { %s159_s18 = sld [smem:[#allocation3 + %s158_s17]]  ;;  %s1702_s19 = sshll.u32 %s158_s17, 4 }
  0x35   : >> { %s1705_s24 = sld [smem:[#allocation4 + %s1702_s19]]  ;;  %s163_s25 = sadd.s32 4, %s1702_s19 }
  0x36   : >> { %s283_s27 = sadd.s32 8, %s1702_s19  ;;  %s1709_s29 = sld [smem:[#allocation4 + %s163_s25]] }
  0x37   : >> { %s285_s5 = sadd.s32 12, %s1702_s19  ;;  %s1712_s6 = sld [smem:[#allocation4 + %s283_s27]] }
  0x38   : >> { %s317_s7 = sadd.s32 9, %s1702_s19  ;;  %s1715_s8 = sld [smem:[#allocation4 + %s285_s5]] }
  0x39   : >> { %s319_s9 = sadd.s32 13, %s1702_s19  ;;  %s1721_s11 = sld [smem:[#allocation4 + %s317_s7]] }
  0x3a   : >> { %s1719_s10 = sshll.u32 %s159_s18, 4  ;;  %s1726_s25 = sld [smem:[#allocation4 + %s319_s9]] }
  0x3b   : >> { %p165_p0 = scmp.lt.s32.totalorder %s1705_s24, 9  ;;  %s603_s30 = sadd.s32 2, %s1702_s19 }
  0x3c   : >> { %p308_p3 = scmp.gt.s32.totalorder %s1709_s29, %s1705_s24  ;;  %s605_s20 = sadd.s32 6, %s1702_s19 }
  0x3d   : >> { %s1724_s17 = scalar_select %p165_p0, %s1705_s24, 9  ;;  %v287_v47 = vstv %s1712_s6 }
  0x3e   : >> { %p2856_p6 = scmp.gt.s32.totalorder %s1715_s8, %s1712_s6  ;;  %v290_v48 = vstv %s1715_s8  ;;  %vm288_vm7 = vcmp.ge.s32.totalorder %v1687_v1, %v287_v47  ;;  %vm289_vm9 = vcmp.ge.s32.totalorder %v1690_v2, %v287_v47 }
  0x3f   : >> { %p167_p1 = scmp.ge.s32.totalorder %s1724_s17, %s1705_s24  ;;  %p168_p2 = scmp.lt.s32.totalorder %s1724_s17, %s1709_s29  ;;  %v321_v52 = vstv %s1721_s11  ;;  %vm291_vm8 = vcmp.lt.s32.totalorder %v1687_v1, %v290_v48  ;;  %vm292_vm10 = vcmp.lt.s32.totalorder %v1690_v2, %v290_v48 }
  0x40   : >> { %s171_s27 = sadd.s32 %s1719_s10, %s1724_s17  ;;  %s181_s18 = sadd.s32 1, %s1724_s17  ;;  %v324_v53 = vstv %s1726_s25  ;;  %vm322_vm11 = vcmp.ge.s32.totalorder %v1687_v1, %v321_v52  ;;  %vm2009_vm13 = vmand %vm288_vm7, %vm291_vm8  ;;  %vm323_vm14 = vcmp.ge.s32.totalorder %v1690_v2, %v321_v52 }
  0x41   : >> { %s1219_s5 = sshll.u32 %s171_s27, 4  ;;  %p182_p5 = scmp.ge.s32.totalorder %s181_s18, %s1705_s24  ;;  %vm325_vm12 = vcmp.lt.s32.totalorder %v1687_v1, %v324_v53  ;;  %vm326_vm15 = vcmp.lt.s32.totalorder %v1690_v2, %v324_v53 }
  0x42   : >> { %p1740_p7 = pnand %p168_p2, %p167_p1  ;;  %p183_p9 = scmp.lt.s32.totalorder %s181_s18, %s1709_s29 }
  0x43   : >> { %s198_s9 = sadd.s32 2, %s1724_s17  ;;  %s215_s16 = sadd.s32 3, %s1724_s17 }
  0x44   : >> { %p1747_p10 = scmp.ge.s32.totalorder %s198_s9, %s1705_s24  ;;  %p1752_p11 = scmp.lt.s32.totalorder %s198_s9, %s1709_s29 }
  0x45   : >> { %p184_p12 = pnand %p183_p9, %p182_p5  ;;  %p1764_p0 = scmp.ge.s32.totalorder %s215_s16, %s1705_s24 }
  0x46   : >> { %s1220_s14 = scalar_select %p1740_p7, 0, 1 }
  0x47   : >> { %p201_p13 = pnand %p1752_p11, %p1747_p10  ;;  %p217_p1 = scmp.lt.s32.totalorder %s215_s16, %s1709_s29 }
  0x48   : >> { %s1225_s2 = scalar_select %p184_p12, 0, 1  ;;  %v177_v3 = vstv %s1220_s14 }
  0x49   : >> { %s232_s9 = sadd.s32 4, %s1724_s17  ;;  %p218_p7 = pnand %p217_p1, %p1764_p0  ;;  %vm178_vm0 = vcmp.eq.s32.totalorder %v177_v3, 1 }
  0x4a   : >> { %p1771_p2 = scmp.ge.s32.totalorder %s232_s9, %s1705_s24  ;;  %p1776_p5 = scmp.lt.s32.totalorder %s232_s9, %s1709_s29  ;;  %v192_v4 = vstv %s1225_s2 }
  0x4b   : >> { %s249_s7 = sadd.s32 5, %s1724_s17  ;;  %s266_s1 = sadd.s32 6, %s1724_s17  ;;  %vm1818_vm1 = vcmp.eq.s32.totalorder %v192_v4, 1 }
  0x4c   : >> { %s1783_s27 = scalar_select %p201_p13, 0, 1 }
  0x4d   : >> { %p235_p9 = pnand %p1776_p5, %p1771_p2  ;;  %p1790_p10 = scmp.ge.s32.totalorder %s249_s7, %s1705_s24 }
  0x4e   : >> { %s1794_s18 = scalar_select %p218_p7, 0, 1  ;;  %v209_v10 = vstv %s1783_s27 }
  0x4f   : >> { %p1797_p11 = scmp.lt.s32.totalorder %s249_s7, %s1709_s29  ;;  %s1802_s4 = scalar_lea.vmem [#allocation5], %s1219_s5  ;;  %vm1858_vm2 = vcmp.eq.s32.totalorder %v209_v10, 1 }
  0x50   : >> { %v174_v5 = vld [vmem:[%s1802_s4] sm:$0xff]  ;;  %p1806_p12 = scmp.ge.s32.totalorder %s266_s1, %s1705_s24  ;;  %p1811_p13 = scmp.lt.s32.totalorder %s266_s1, %s1709_s29  ;;  %v175_v6 = vld [vmem:[%s1802_s4 + $0x8] sm:$0xff]  ;;  %v1223_v7 = vld [vmem:[%s1802_s4 + $0x10] sm:$0xff]  ;;  %v226_v18 = vstv %s1794_s18 }
  0x51   : >> { %v1224_v8 = vld [vmem:[%s1802_s4 + $0x18] sm:$0xff]  ;;  %p252_p0 = pnand %p1797_p11, %p1790_p10  ;;  %s350_s1 = sadd.s32 10, %s1702_s19  ;;  %v179_v11 = vsel %vm178_vm0, %v174_v5, -inf  ;;  %v180_v12 = vsel %vm178_vm0, %v175_v6, -inf  ;;  %v194_v13 = vsel %vm1818_vm1, %v1223_v7, -inf  ;;  %v1228_v15 = vld [vmem:[%s1802_s4 + $0x20] sm:$0xff]  ;;  %vm2021_vm0 = vmand %vm289_vm9, %vm292_vm10 }
  0x52   : >> { %s1833_s17 = scalar_select %p235_p9, 0, 1  ;;  %v195_v14 = vsel %vm1818_vm1, %v1224_v8, -inf  ;;  %v1229_v16 = vld [vmem:[%s1802_s4 + $0x28] sm:$0xff]  ;;  %v196_v19 = vmax.f32 %v179_v11, %v194_v13  ;;  %v211_v21 = vsel %vm1858_vm2, %v1228_v15, -inf  ;;  %v1233_v23 = vld [vmem:[%s1802_s4 + $0x30] sm:$0xff]  ;;  %vm2033_vm1 = vmand %vm322_vm11, %vm325_vm12 }
  0x53   : >> { %p269_p1 = pnand %p1811_p13, %p1806_p12  ;;  %s352_s5 = sadd.s32 14, %s1702_s19  ;;  %v197_v20 = vmax.f32 %v180_v12, %v195_v14  ;;  %v212_v22 = vsel %vm1858_vm2, %v1229_v16, -inf  ;;  %v1234_v24 = vld [vmem:[%s1802_s4 + $0x38] sm:$0xff]  ;;  %vm1889_vm3 = vcmp.eq.s32.totalorder %v226_v18, 1  ;;  %v1238_v31 = vld [vmem:[%s1802_s4 + $0x40] sm:$0xff]  ;;  %v1239_v32 = vld [vmem:[%s1802_s4 + $0x48] sm:$0xff] }
  0x54   : >> { %p1850_p2 = pnand %p2856_p6, %p308_p3  ;;  %s1854_s12 = sld [smem:[#allocation4 + %s350_s1]]  ;;  %v243_v26 = vstv %s1833_s17  ;;  %v213_v27 = vmax.f32 %v196_v19, %v211_v21  ;;  %v228_v29 = vsel %vm1889_vm3, %v1233_v23, -inf  ;;  %v229_v30 = vsel %vm1889_vm3, %v1234_v24, -inf  ;;  %v1243_v39 = vld [vmem:[%s1802_s4 + $0x50] sm:$0xff]  ;;  %v1244_v40 = vld [vmem:[%s1802_s4 + $0x58] sm:$0xff]  ;;  %v1248_v49 = vld [vmem:[%s1802_s4 + $0x60] sm:$0xff] }
  0x55   : >> { %s1867_s7 = scalar_select %p252_p0, 0, 1  ;;  %v214_v28 = vmax.f32 %v197_v20, %v212_v22  ;;  %vm1920_vm4 = vcmp.eq.s32.totalorder %v243_v26, 1  ;;  %v1249_v50 = vld [vmem:[%s1802_s4 + $0x68] sm:$0xff]  ;;  %vm2047_vm2 = vmand %vm323_vm14, %vm326_vm15 }
  0x56   : >> { %p2855_p5 = scmp.gt.s32.totalorder %s1726_s25, %s1721_s11  ;;  %s1872_s27 = sld [smem:[#allocation4 + %s352_s5]]  ;;  %v230_v35 = vmax.f32 %v213_v27, %v228_v29  ;;  %v245_v37 = vsel %vm1920_vm4, %v1238_v31, -inf  ;;  %v246_v38 = vsel %vm1920_vm4, %v1239_v32, -inf }
  0x57   : >> { %s1879_s16 = scalar_select %p269_p1, 0, 1  ;;  %v260_v34 = vstv %s1867_s7  ;;  %v231_v36 = vmax.f32 %v214_v28, %v229_v30 }
  0x58   : >> { %s383_s9 = sadd.s32 11, %s1702_s19  ;;  %s416_s2 = sadd.s32 1, %s1702_s19  ;;  %vm1949_vm5 = vcmp.eq.s32.totalorder %v260_v34, 1  ;;  %v247_v43 = vmax.f32 %v230_v35, %v245_v37 }
  0x59   : >> { %p1902_p7 = pnand %p2855_p5, %p308_p3  ;;  %s385_s1 = sadd.s32 15, %s1702_s19  ;;  %v277_v42 = vstv %s1879_s16  ;;  %v248_v44 = vmax.f32 %v231_v36, %v246_v38  ;;  %v262_v45 = vsel %vm1949_vm5, %v1243_v39, -inf  ;;  %v263_v46 = vsel %vm1949_vm5, %v1244_v40, -inf }
  0x5a   : >> { %s1907_s5 = sld [smem:[#allocation4 + %s416_s2]]  ;;  %s418_s18 = sadd.s32 5, %s1702_s19  ;;  %vm1973_vm6 = vcmp.eq.s32.totalorder %v277_v42, 1  ;;  %v264_v54 = vmax.f32 %v247_v43, %v262_v45  ;;  %v354_v62 = vstv %s1854_s12 }
  0x5b   : >> { %s1916_s17 = sld [smem:[#allocation4 + %s383_s9]]  ;;  %v265_v55 = vmax.f32 %v248_v44, %v263_v46  ;;  %v279_v56 = vsel %vm1973_vm6, %v1248_v49, -inf  ;;  %v280_v57 = vsel %vm1973_vm6, %v1249_v50, -inf  ;;  %vm2057_vm3 = vcmp.ge.s32.totalorder %v1687_v1, %v354_v62 }
  0x5c   : >> { %p2850_p9 = scmp.gt.s32.totalorder %s1872_s27, %s1854_s12  ;;  %s1924_s2 = sld [smem:[#allocation4 + %s385_s1]]  ;;  %v2017_v59 = vmax.f32 %v264_v54, %v279_v56  ;;  %v357_v63 = vstv %s1872_s27  ;;  %vm2086_vm6 = vcmp.ge.s32.totalorder %v1690_v2, %v354_v62 }
  0x5d   : >> { %s1927_s0 = sld [smem:[#allocation4 + %s418_s18]]  ;;  %v2019_v60 = vmax.f32 %v265_v55, %v280_v57  ;;  %vm2062_vm4 = vcmp.lt.s32.totalorder %v1687_v1, %v357_v63  ;;  %vm2091_vm7 = vcmp.lt.s32.totalorder %v1690_v2, %v357_v63 }
  0x5e   : >> { %p1936_p10 = pnand %p2850_p9, %p308_p3  ;;  %s1954_s18 = sld [smem:[#allocation4 + %s603_s30]]  ;;  %v299_v9 = vsel %vm2009_vm13, %v2017_v59, -inf  ;;  %v333_v13 = vsel %vm2033_vm1, %v2017_v59, -inf  ;;  %vm2112_vm8 = vmand %vm2057_vm3, %vm2062_vm4 }
  0x5f   : >> { %s1957_s1 = sld [smem:[#allocation4 + %s605_s20]]  ;;  %v300_v10 = vsel %vm2021_vm0, %v2019_v60, -inf  ;;  %v334_v14 = vsel %vm2047_vm2, %v2019_v60, -inf  ;;  %vm2129_vm9 = vmand %vm2086_vm6, %vm2091_vm7  ;;  %v366_v34 = vsel %vm2112_vm8, %v2017_v59, -inf }
  0x60   : >> { %p420_p11 = scmp.lt.s32.totalorder %s1907_s5, 9  ;;  %v2123_v22 = vmax.f32 %v299_v9, %v300_v10  ;;  %v335_v26 = vmax.f32 %v333_v13, %v334_v14  ;;  %v367_v35 = vsel %vm2129_vm9, %v2019_v60, -inf }
  0x61   : >> { %v387_v30 = vstv %s1916_s17  ;;  %v368_v49 = vmax.f32 %v366_v34, %v367_v35  ;;  %s2959_s22 = scalar_select %p1850_p2, 0, 1 }
  0x62   : >> { %s1969_s30 = scalar_select %p420_p11, %s1907_s5, 9  ;;  %v390_v36 = vstv %s1924_s2  ;;  %v302_v38 = vrot.slane %v2123_v22, 4  ;;  %v336_v43 = vrot.slane %v335_v26, 4  ;;  %vm2178_vm12 = vcmp.ge.s32.totalorder %v1687_v1, %v387_v30 }
  0x63   : >> { %p408_p12 = scmp.gt.s32.totalorder %s1924_s2, %s1916_s17  ;;  %vm2183_vm14 = vcmp.ge.s32.totalorder %v1690_v2, %v387_v30  ;;  %vm2196_vm15 = vcmp.lt.s32.totalorder %v1687_v1, %v390_v36  ;;  %vm392_vm4 = vcmp.lt.s32.totalorder %v1690_v2, %v390_v36  ;;  %v369_v13 = vrot.slane %v368_v49, 4  ;;  %s3014_s2 = sld [smem:[#allocation23_spill]] }
  0x64   : >> { %p422_p0 = scmp.ge.s32.totalorder %s1969_s30, %s1907_s5  ;;  %p423_p1 = scmp.lt.s32.totalorder %s1969_s30, %s1927_s0  ;;  %vm2234_vm6 = vmand %vm2178_vm12, %vm2196_vm15  ;;  %v337_v9 = vmax.f32 %v335_v26, %v336_v43  ;;  %v313_v36 = vstv %s2959_s22 }
  0x65   : >> { %s426_s20 = sadd.s32 %s1719_s10, %s1969_s30  ;;  %s436_s16 = sadd.s32 1, %s1969_s30  ;;  %vm2240_vm7 = vmand %vm2183_vm14, %vm392_vm4  ;;  %v399_v14 = vsel %vm2234_vm6, %v2017_v59, -inf  ;;  %v370_v26 = vmax.f32 %v368_v49, %v369_v13  ;;  %vm314_vm14 = vcmp.eq.s32.totalorder %v313_v36, 1 }
  0x66   : >> { %p1998_p11 = pnand %p423_p1, %p422_p0  ;;  %s1255_s23 = sshll.u32 %s426_s20, 4 }
  0x67   : >> { %p2005_p9 = scmp.ge.s32.totalorder %s436_s16, %s1907_s5  ;;  %p2028_p0 = scmp.lt.s32.totalorder %s436_s16, %s1927_s0 }
  0x68   : >> { %s1256_s20 = scalar_select %p1998_p11, 0, 1 }
  0x69   : >> { %s453_s21 = sadd.s32 2, %s1969_s30  ;;  %p439_p5 = pnand %p2028_p0, %p2005_p9 }
  0x6a   : >> { %v432_v3 = vstv %s1256_s20  ;;  %p2038_p1 = scmp.ge.s32.totalorder %s453_s21, %s1907_s5  ;;  %p2043_p11 = scmp.lt.s32.totalorder %s453_s21, %s1927_s0 }
  0x6b   : >> { %s470_s16 = sadd.s32 3, %s1969_s30  ;;  %s2066_s21 = scalar_lea.vmem [#allocation5], %s1255_s23  ;;  %vm433_vm5 = vcmp.eq.s32.totalorder %v432_v3, 1 }
  0x6c   : >> { %v429_v7 = vld [vmem:[%s2066_s21] sm:$0xff]  ;;  %v430_v8 = vld [vmem:[%s2066_s21 + $0x8] sm:$0xff]  ;;  %p456_p13 = pnand %p2043_p11, %p2038_p1  ;;  %p2075_p6 = scmp.ge.s32.totalorder %s470_s16, %s1907_s5  ;;  %v1259_v15 = vld [vmem:[%s2066_s21 + $0x10] sm:$0xff] }
  0x6d   : >> { %s1261_s3 = scalar_select %p439_p5, 0, 1  ;;  %v1260_v16 = vld [vmem:[%s2066_s21 + $0x18] sm:$0xff]  ;;  %v434_v18 = vsel %vm433_vm5, %v429_v7, -inf  ;;  %v435_v19 = vsel %vm433_vm5, %v430_v8, -inf  ;;  %v1264_v21 = vld [vmem:[%s2066_s21 + $0x20] sm:$0xff]  ;;  %v303_v8 = vmax.f32 %v2123_v22, %v302_v38 }
  0x6e   : >> { %s1266_s23 = scalar_select %p456_p13, 0, 1  ;;  %v1265_v24 = vld [vmem:[%s2066_s21 + $0x28] sm:$0xff]  ;;  %v1269_v41 = vld [vmem:[%s2066_s21 + $0x30] sm:$0xff]  ;;  %v1270_v42 = vld [vmem:[%s2066_s21 + $0x38] sm:$0xff] }
  0x6f   : >> { %v447_v20 = vstv %s1261_s3  ;;  %p2118_p5 = scmp.lt.s32.totalorder %s470_s16, %s1927_s0  ;;  %s487_s7 = sadd.s32 4, %s1969_s30  ;;  %v1274_v47 = vld [vmem:[%s2066_s21 + $0x40] sm:$0xff]  ;;  %v1275_v48 = vld [vmem:[%s2066_s21 + $0x48] sm:$0xff]  ;;  %v1279_v6 = vld [vmem:[%s2066_s21 + $0x50] sm:$0xff] }
  0x70   : >> { %vm448_vm10 = vcmp.eq.s32.totalorder %v447_v20, 1  ;;  %v464_v25 = vstv %s1266_s23  ;;  %p2135_p9 = scmp.ge.s32.totalorder %s487_s7, %s1907_s5  ;;  %p2140_p13 = scmp.lt.s32.totalorder %s487_s7, %s1927_s0  ;;  %v1280_v7 = vld [vmem:[%s2066_s21 + $0x58] sm:$0xff]  ;;  %v1284_v11 = vld [vmem:[%s2066_s21 + $0x60] sm:$0xff]  ;;  %v1285_v12 = vld [vmem:[%s2066_s21 + $0x68] sm:$0xff] }
  0x71   : >> { %v449_v27 = vsel %vm448_vm10, %v1259_v15, -inf  ;;  %v450_v28 = vsel %vm448_vm10, %v1260_v16, -inf  ;;  %vm2144_vm11 = vcmp.eq.s32.totalorder %v464_v25, 1  ;;  %p473_p0 = pnand %p2118_p5, %p2075_p6  ;;  %s504_s3 = sadd.s32 5, %s1969_s30  ;;  %v400_v16 = vsel %vm2240_vm7, %v2019_v60, -inf }
  0x72   : >> { %v451_v31 = vmax.f32 %v434_v18, %v449_v27  ;;  %v452_v32 = vmax.f32 %v435_v19, %v450_v28  ;;  %v466_v33 = vsel %vm2144_vm11, %v1264_v21, -inf  ;;  %p490_p1 = pnand %p2140_p13, %p2135_p9  ;;  %p2161_p11 = scmp.ge.s32.totalorder %s504_s3, %s1907_s5  ;;  %v467_v37 = vsel %vm2144_vm11, %v1265_v24, -inf }
  0x73   : >> { %s1271_s20 = scalar_select %p473_p0, 0, 1  ;;  %v304_v60 = vrot.slane %v303_v8, 2  ;;  %v338_v24 = vrot.slane %v337_v9, 2  ;;  %v401_v25 = vmax.f32 %v399_v14, %v400_v16 }
  0x74   : >> { %v468_v39 = vmax.f32 %v451_v31, %v466_v33  ;;  %v469_v40 = vmax.f32 %v452_v32, %v467_v37  ;;  %s1276_s28 = scalar_select %p490_p1, 0, 1  ;;  %v371_v32 = vrot.slane %v370_v26, 2 }
  0x75   : >> { %v481_v46 = vstv %s1271_s20  ;;  %p2190_p6 = scmp.lt.s32.totalorder %s504_s3, %s1927_s0  ;;  %s521_s4 = sadd.s32 6, %s1969_s30  ;;  %v305_v29 = vmax.f32 %v303_v8, %v304_v60  ;;  %v339_v30 = vmax.f32 %v337_v9, %v338_v24  ;;  %v402_v31 = vrot.slane %v401_v25, 4 }
  0x76   : >> { %vm482_vm3 = vcmp.eq.s32.totalorder %v481_v46, 1  ;;  %v498_v51 = vstv %s1276_s28  ;;  %p2201_p5 = scmp.ge.s32.totalorder %s521_s4, %s1907_s5  ;;  %p2206_p9 = scmp.lt.s32.totalorder %s521_s4, %s1927_s0 }
  0x77   : >> { %p2217_p13 = pnand %p408_p12, %p308_p3  ;;  %v483_v52 = vsel %vm482_vm3, %v1269_v41, -inf  ;;  %v484_v53 = vsel %vm482_vm3, %v1270_v42, -inf  ;;  %vm499_vm5 = vcmp.eq.s32.totalorder %v498_v51, 1  ;;  %p507_p0 = pnand %p2190_p6, %p2161_p11  ;;  %v306_v35 = vrot.slane %v305_v29, 1 }
  0x78   : >> { %v485_v54 = vmax.f32 %v468_v39, %v483_v52  ;;  %v486_v55 = vmax.f32 %v469_v40, %v484_v53  ;;  %v500_v56 = vsel %vm499_vm5, %v1274_v47, -inf  ;;  %v501_v57 = vsel %vm499_vm5, %v1275_v48, -inf  ;;  %p524_p3 = pnand %p2206_p9, %p2201_p5  ;;  %p607_p1 = scmp.lt.s32.totalorder %s1954_s18, 9 }
  0x79   : >> { %s1281_s24 = scalar_select %p507_p0, 0, 1  ;;  %v340_v37 = vrot.slane %v339_v30, 1  ;;  %v403_v40 = vmax.f32 %v401_v25, %v402_v31  ;;  %v372_v42 = vmax.f32 %v370_v26, %v371_v32  ;;  %v307_v47 = vmax.f32 %v305_v29, %v306_v35 }
  0x7a   : >> { %v502_v3 = vmax.f32 %v485_v54, %v500_v56  ;;  %v503_v5 = vmax.f32 %v486_v55, %v501_v57  ;;  %s1286_s29 = scalar_select %p524_p3, 0, 1 }
  0x7b   : >> { %v515_v10 = vstv %s1281_s24  ;;  %p2950_p11 = scmp.gt.s32.totalorder %s1715_s8, %s1712_s6  ;;  %p2951_p6 = scmp.gt.s32.totalorder %s1927_s0, %s1907_s5  ;;  %v341_v48 = vmax.f32 %v339_v30, %v340_v37  ;;  %v373_v56 = vrot.slane %v372_v42, 1  ;;  %v404_v57 = vrot.slane %v403_v40, 2 }
  0x7c   : >> { %vm516_vm10 = vcmp.eq.s32.totalorder %v515_v10, 1  ;;  %v532_v15 = vstv %s1286_s29  ;;  %p2953_p9 = scmp.gt.s32.totalorder %s1726_s25, %s1721_s11  ;;  %s2956_s28 = sadd.s32 3, %s1702_s19 }
  0x7d   : >> { %p2255_p5 = pnand %p2951_p6, %p2950_p11  ;;  %p2954_p0 = pmov %p2951_p6  ;;  %v517_v59 = vsel %vm516_vm10, %v1279_v6, -inf  ;;  %v518_v18 = vsel %vm516_vm10, %v1280_v7, -inf  ;;  %vm533_vm11 = vcmp.eq.s32.totalorder %v532_v15, 1  ;;  %v374_v25 = vmax.f32 %v372_v42, %v373_v56 }
  0x7e   : >> { %s2275_s7 = sld [smem:[#allocation4 + %s2956_s28]]  ;;  %v519_v19 = vmax.f32 %v502_v3, %v517_v59  ;;  %v520_v20 = vmax.f32 %v503_v5, %v518_v18  ;;  %v534_v21 = vsel %vm533_vm11, %v1284_v11, -inf  ;;  %v535_v22 = vsel %vm533_vm11, %v1285_v12, -inf }
  0x7f   : >> { %p2269_p3 = pnand %p2954_p0, %p2953_p9 }
  0x80   : >> { %s2285_s16 = scalar_select %p607_p1, %s1954_s18, 9  ;;  %v2291_v27 = vmax.f32 %v519_v19, %v534_v21  ;;  %v2293_v28 = vmax.f32 %v520_v20, %v535_v22  ;;  %v315_v20 = vsel %vm314_vm14, %v307_v47, 0.0  ;;  %v2426_v22 = vmax.f32 %v403_v40, %v404_v57 }
  0x81   : >> { %s2964_s4 = scalar_select %p1936_p10, 0, 1 }
  0x82   : >> { %p609_p1 = scmp.ge.s32.totalorder %s2285_s16, %s1954_s18  ;;  %p610_p11 = scmp.lt.s32.totalorder %s2285_s16, %s1957_s1  ;;  %v538_v33 = vsel %vm2009_vm13, %v2291_v27, -inf  ;;  %v539_v34 = vsel %vm2021_vm0, %v2293_v28, -inf  ;;  %v555_v43 = vsel %vm2033_vm1, %v2291_v27, -inf  ;;  %v556_v44 = vsel %vm2047_vm2, %v2293_v28, -inf }
  0x83   : >> { %s613_s29 = sadd.s32 %s1719_s10, %s2285_s16  ;;  %s623_s28 = sadd.s32 1, %s2285_s16  ;;  %v540_v41 = vmax.f32 %v538_v33, %v539_v34  ;;  %v2362_v49 = vstv %s2964_s4  ;;  %v557_v53 = vmax.f32 %v555_v43, %v556_v44  ;;  %v571_v6 = vsel %vm2112_vm8, %v2291_v27, -inf }
  0x84   : >> { %p611_p6 = pnand %p610_p11, %p609_p1  ;;  %s1291_s3 = sshll.u32 %s613_s29, 4  ;;  %v572_v11 = vsel %vm2129_vm9, %v2293_v28, -inf  ;;  %v587_v12 = vsel %vm2234_vm6, %v2291_v27, -inf  ;;  %v588_v13 = vsel %vm2240_vm7, %v2293_v28, -inf  ;;  %vm380_vm11 = vcmp.eq.s32.totalorder %v2362_v49, 1 }
  0x85   : >> { %p2303_p9 = scmp.ge.s32.totalorder %s623_s28, %s1954_s18  ;;  %p2314_p0 = scmp.lt.s32.totalorder %s623_s28, %s1957_s1  ;;  %v541_v52 = vrot.slane %v540_v41, 4  ;;  %v558_v59 = vrot.slane %v557_v53, 4  ;;  %v573_v26 = vmax.f32 %v571_v6, %v572_v11  ;;  %v589_v32 = vmax.f32 %v587_v12, %v588_v13 }
  0x86   : >> { %s1292_s20 = scalar_select %p611_p6, 0, 1  ;;  %v406_v47 = vrot.slane %v2426_v22, 1  ;;  %v381_v5 = vsel %vm380_vm11, %v374_v25, 0.0 }
  0x87   : >> { %s640_s29 = sadd.s32 2, %s2285_s16  ;;  %p626_p2 = pnand %p2314_p0, %p2303_p9  ;;  %v542_v16 = vmax.f32 %v540_v41, %v541_v52  ;;  %v559_v37 = vmax.f32 %v557_v53, %v558_v59  ;;  %v574_v43 = vrot.slane %v573_v26, 4 }
  0x88   : >> { %v619_v38 = vstv %s1292_s20  ;;  %p2323_p1 = scmp.ge.s32.totalorder %s640_s29, %s1954_s18  ;;  %p2328_p11 = scmp.lt.s32.totalorder %s640_s29, %s1957_s1 }
  0x89   : >> { %s2962_s28 = scalar_select %p1902_p7, 0, 1  ;;  %vm620_vm12 = vcmp.eq.s32.totalorder %v619_v38, 1  ;;  %v543_v36 = vrot.slane %v542_v16, 2  ;;  %v560_v53 = vrot.slane %v559_v37, 2 }
  0x8a   : >> { %s657_s22 = sadd.s32 3, %s2285_s16  ;;  %s2346_s26 = scalar_lea.vmem [#allocation5], %s1291_s3 }
  0x8b   : >> { %v346_v39 = vstv %s2962_s28  ;;  %v616_v45 = vld [vmem:[%s2346_s26] sm:$0xff]  ;;  %p643_p7 = pnand %p2328_p11, %p2323_p1  ;;  %p2354_p6 = scmp.ge.s32.totalorder %s657_s22, %s1954_s18  ;;  %v617_v46 = vld [vmem:[%s2346_s26 + $0x8] sm:$0xff]  ;;  %v1295_v50 = vld [vmem:[%s2346_s26 + $0x10] sm:$0xff]  ;;  %v544_v6 = vmax.f32 %v542_v16, %v543_v36 }
  0x8c   : >> { %s1297_s20 = scalar_select %p626_p2, 0, 1  ;;  %vm347_vm15 = vcmp.eq.s32.totalorder %v346_v39, 1  ;;  %v1296_v51 = vld [vmem:[%s2346_s26 + $0x18] sm:$0xff]  ;;  %v621_v54 = vsel %vm620_vm12, %v616_v45, -inf  ;;  %v622_v3 = vsel %vm620_vm12, %v617_v46, -inf }
  0x8d   : >> { %s1302_s13 = scalar_select %p643_p7, 0, 1  ;;  %v1300_v9 = vld [vmem:[%s2346_s26 + $0x20] sm:$0xff]  ;;  %v1301_v15 = vld [vmem:[%s2346_s26 + $0x28] sm:$0xff]  ;;  %v348_v21 = vsel %vm347_vm15, %v341_v48, 0.0  ;;  %v1305_v24 = vld [vmem:[%s2346_s26 + $0x30] sm:$0xff] }
  0x8e   : >> { %v634_v55 = vstv %s1297_s20  ;;  %p2368_p9 = scmp.lt.s32.totalorder %s657_s22, %s1957_s1  ;;  %s674_s9 = sadd.s32 4, %s2285_s16  ;;  %v1306_v29 = vld [vmem:[%s2346_s26 + $0x38] sm:$0xff]  ;;  %v1310_v30 = vld [vmem:[%s2346_s26 + $0x40] sm:$0xff]  ;;  %v1311_v31 = vld [vmem:[%s2346_s26 + $0x48] sm:$0xff]  ;;  %v349_v46 = vadd.f32 %v348_v21, %v315_v20  ;;  %v545_v59 = vrot.slane %v544_v6, 1 }
  0x8f   : >> { %vm2374_vm3 = vcmp.eq.s32.totalorder %v634_v55, 1  ;;  %p2379_p10 = scmp.ge.s32.totalorder %s674_s9, %s1954_s18  ;;  %p2384_p0 = scmp.lt.s32.totalorder %s674_s9, %s1957_s1  ;;  %v651_v10 = vstv %s1302_s13  ;;  %v1316_v52 = vld [vmem:[%s2346_s26 + $0x58] sm:$0xff]  ;;  %v1320_v57 = vld [vmem:[%s2346_s26 + $0x60] sm:$0xff] }
  0x90   : >> { %v636_v7 = vsel %vm2374_vm3, %v1295_v50, -inf  ;;  %v637_v8 = vsel %vm2374_vm3, %v1296_v51, -inf  ;;  %p660_p1 = pnand %p2368_p9, %p2354_p6  ;;  %s691_s29 = sadd.s32 5, %s2285_s16  ;;  %vm2420_vm4 = vcmp.eq.s32.totalorder %v651_v10, 1  ;;  %v590_v50 = vrot.slane %v589_v32, 4  ;;  %v1315_v51 = vld [vmem:[%s2346_s26 + $0x50] sm:$0xff] }
  0x91   : >> { %v638_v14 = vmax.f32 %v621_v54, %v636_v7  ;;  %p677_p11 = pnand %p2384_p0, %p2379_p10  ;;  %p2416_p2 = scmp.ge.s32.totalorder %s691_s29, %s1954_s18  ;;  %v639_v18 = vmax.f32 %v622_v3, %v637_v8  ;;  %v653_v60 = vsel %vm2420_vm4, %v1300_v9, -inf  ;;  %v654_v27 = vsel %vm2420_vm4, %v1301_v15, -inf  ;;  %v1321_v3 = vld [vmem:[%s2346_s26 + $0x68] sm:$0xff] }
  0x92   : >> { %s1307_s22 = scalar_select %p660_p1, 0, 1  ;;  %v575_v8 = vmax.f32 %v573_v26, %v574_v43  ;;  %v561_v15 = vmax.f32 %v559_v37, %v560_v53  ;;  %v591_v16 = vmax.f32 %v589_v32, %v590_v50  ;;  %v382_v20 = vadd.f32 %v381_v5, %v349_v46 }
  0x93   : >> { %s1312_s14 = scalar_select %p677_p11, 0, 1  ;;  %v655_v28 = vmax.f32 %v638_v14, %v653_v60  ;;  %v656_v33 = vmax.f32 %v639_v18, %v654_v27  ;;  %v407_v14 = vmax.f32 %v2426_v22, %v406_v47 }
  0x94   : >> { %p2437_p7 = scmp.lt.s32.totalorder %s691_s29, %s1957_s1  ;;  %s708_s4 = sadd.s32 6, %s2285_s16  ;;  %v668_v34 = vstv %s1307_s22  ;;  %v576_v22 = vrot.slane %v575_v8, 2 }
  0x95   : >> { %v685_v35 = vstv %s1312_s14  ;;  %p2443_p6 = scmp.ge.s32.totalorder %s708_s4, %s1954_s18  ;;  %p2448_p9 = scmp.lt.s32.totalorder %s708_s4, %s1957_s1  ;;  %vm669_vm5 = vcmp.eq.s32.totalorder %v668_v34, 1 }
  0x96   : >> { %p2976_p10 = scmp.gt.s32.totalorder %s1872_s27, %s1854_s12  ;;  %p2977_p0 = scmp.gt.s32.totalorder %s1927_s0, %s1907_s5  ;;  %vm2462_vm10 = vcmp.eq.s32.totalorder %v685_v35, 1  ;;  %v670_v39 = vsel %vm669_vm5, %v1305_v24, -inf  ;;  %v671_v40 = vsel %vm669_vm5, %v1306_v29, -inf  ;;  %v592_v29 = vrot.slane %v591_v16, 2 }
  0x97   : >> { %p694_p11 = pnand %p2437_p7, %p2416_p2  ;;  %v687_v41 = vsel %vm2462_vm10, %v1310_v30, -inf  ;;  %v688_v42 = vsel %vm2462_vm10, %v1311_v31, -inf  ;;  %v672_v44 = vmax.f32 %v655_v28, %v670_v39  ;;  %v673_v45 = vmax.f32 %v656_v33, %v671_v40  ;;  %p2982_p2 = scmp.gt.s32.totalorder %s1927_s0, %s1907_s5 }
  0x98   : >> { %p2458_p1 = pnand %p2977_p0, %p2976_p10  ;;  %p711_p10 = pnand %p2448_p9, %p2443_p6  ;;  %v562_v28 = vrot.slane %v561_v15, 1  ;;  %v546_v31 = vmax.f32 %v544_v6, %v545_v59  ;;  %v577_v35 = vmax.f32 %v575_v8, %v576_v22  ;;  %v593_v39 = vmax.f32 %v591_v16, %v592_v29 }
  0x99   : >> { %p734_p0 = scmp.gt.s32.totalorder %s1957_s1, %s1954_s18  ;;  %p2493_p7 = pnand %p2982_p2, %p408_p12  ;;  %v689_v54 = vmax.f32 %v672_v44, %v687_v41  ;;  %v690_v55 = vmax.f32 %v673_v45, %v688_v42 }
  0x9a   : >> { %s1317_s9 = scalar_select %p694_p11, 0, 1  ;;  %v563_v44 = vmax.f32 %v561_v15, %v562_v28  ;;  %v578_v46 = vrot.slane %v577_v35, 1 }
  0x9b   : >> { %s2981_s3 = scalar_select %p2217_p13, 0, 1 }
  0x9c   : >> { %s1322_s24 = scalar_select %p711_p10, 0, 1  ;;  %v702_v56 = vstv %s1317_s9 }
  0x9d   : >> { %v412_v48 = vstv %s2981_s3  ;;  %s1289_s0 = scalar_select %p2458_p1, 0, 1  ;;  %vm703_vm12 = vcmp.eq.s32.totalorder %v702_v56, 1 }
  0x9e   : >> { %v719_v7 = vstv %s1322_s24  ;;  %v704_v9 = vsel %vm703_vm12, %v1315_v51, -inf  ;;  %v705_v10 = vsel %vm703_vm12, %v1316_v52, -inf  ;;  %s2984_s5 = sadd.s32 7, %s1702_s19  ;;  %p2985_p13 = scmp.gt.s32.totalorder %s1715_s8, %s1712_s6  ;;  %vm413_vm15 = vcmp.eq.s32.totalorder %v412_v48, 1 }
  0x9f   : >> { %vm720_vm14 = vcmp.eq.s32.totalorder %v719_v7, 1  ;;  %s2505_s30 = sld [smem:[#allocation4 + %s2984_s5]]  ;;  %v706_v49 = vmax.f32 %v689_v54, %v704_v9  ;;  %v707_v11 = vmax.f32 %v690_v55, %v705_v10  ;;  %p2987_p9 = scmp.gt.s32.totalorder %s1726_s25, %s1721_s11  ;;  %v414_v27 = vsel %vm413_vm15, %v407_v14, 0.0 }
  0xa0   : >> { %v721_v12 = vsel %vm720_vm14, %v1320_v57, -inf  ;;  %v722_v13 = vsel %vm720_vm14, %v1321_v3, -inf  ;;  %p2513_p6 = pnand %p734_p0, %p2985_p13  ;;  %p794_p10 = scmp.lt.s32.totalorder %s2275_s7, 9  ;;  %v415_v36 = vadd.f32 %v414_v27, %v382_v20  ;;  %v583_v47 = vstv %s1289_s0 }
  0xa1   : >> { %s1290_s19 = scalar_select %p2493_p7, 0, 1  ;;  %v723_v18 = vmax.f32 %v706_v49, %v721_v12  ;;  %v724_v19 = vmax.f32 %v707_v11, %v722_v13  ;;  %v594_v52 = vrot.slane %v593_v39, 1  ;;  %v579_v57 = vmax.f32 %v577_v35, %v578_v46 }
  0xa2   : >> { %p2526_p11 = pnand %p734_p0, %p2987_p9  ;;  %vm584_vm10 = vcmp.eq.s32.totalorder %v583_v47, 1 }
  0xa3   : >> { %s2989_s22 = scalar_select %p2255_p5, 0, 1  ;;  %v725_v60 = vsel %vm2009_vm13, %v723_v18, -inf  ;;  %v726_v24 = vsel %vm2021_vm0, %v724_v19, -inf  ;;  %v742_v25 = vsel %vm2033_vm1, %v723_v18, -inf  ;;  %v743_v26 = vsel %vm2047_vm2, %v724_v19, -inf }
  0xa4   : >> { %s1323_s14 = scalar_select %p2513_p6, 0, 1  ;;  %v727_v30 = vmax.f32 %v725_v60, %v726_v24  ;;  %v744_v32 = vmax.f32 %v742_v25, %v743_v26  ;;  %v758_v33 = vsel %vm2112_vm8, %v723_v18, -inf  ;;  %v759_v34 = vsel %vm2129_vm9, %v724_v19, -inf }
  0xa5   : >> { %v551_v21 = vstv %s2989_s22  ;;  %s2545_s23 = scalar_select %p794_p10, %s2275_s7, 9  ;;  %v760_v40 = vmax.f32 %v758_v33, %v759_v34  ;;  %v774_v41 = vsel %vm2234_vm6, %v723_v18, -inf  ;;  %v775_v42 = vsel %vm2240_vm7, %v724_v19, -inf }
  0xa6   : >> { %s1324_s20 = scalar_select %p2526_p11, 0, 1  ;;  %vm552_vm3 = vcmp.eq.s32.totalorder %v551_v21, 1  ;;  %v728_v38 = vrot.slane %v727_v30, 4  ;;  %v745_v45 = vrot.slane %v744_v32, 4  ;;  %v776_v50 = vmax.f32 %v774_v41, %v775_v42 }
  0xa7   : >> { %p796_p5 = scmp.ge.s32.totalorder %s2545_s23, %s2275_s7  ;;  %p797_p2 = scmp.lt.s32.totalorder %s2545_s23, %s2505_s30  ;;  %v553_v43 = vsel %vm552_vm3, %v546_v31, 0.0  ;;  %v761_v53 = vrot.slane %v760_v40, 4  ;;  %v599_v6 = vstv %s1290_s19  ;;  %v595_v10 = vmax.f32 %v593_v39, %v594_v52 }
  0xa8   : >> { %s2990_s4 = scalar_select %p2269_p3, 0, 1  ;;  %v729_v48 = vmax.f32 %v727_v30, %v728_v38  ;;  %v554_v51 = vadd.f32 %v553_v43, %v415_v36  ;;  %v746_v56 = vmax.f32 %v744_v32, %v745_v45  ;;  %v777_v8 = vrot.slane %v776_v50, 4 }
  0xa9   : >> { %s800_s13 = sadd.s32 %s1719_s10, %s2545_s23  ;;  %s810_s15 = sadd.s32 1, %s2545_s23  ;;  %v762_v49 = vmax.f32 %v760_v40, %v761_v53  ;;  %v585_v59 = vsel %vm584_vm10, %v579_v57, 0.0  ;;  %vm600_vm11 = vcmp.eq.s32.totalorder %v599_v6, 1  ;;  %v738_v31 = vstv %s1323_s14 }
  0xaa   : >> { %v567_v37 = vstv %s2990_s4  ;;  %p2567_p13 = pnand %p797_p2, %p796_p5  ;;  %s1327_s21 = sshll.u32 %s800_s13, 4  ;;  %v730_v7 = vrot.slane %v729_v48, 2  ;;  %v747_v13 = vrot.slane %v746_v56, 2  ;;  %v778_v19 = vmax.f32 %v776_v50, %v777_v8 }
  0xab   : >> { %p2572_p3 = scmp.ge.s32.totalorder %s810_s15, %s2275_s7  ;;  %vm568_vm4 = vcmp.eq.s32.totalorder %v567_v37, 1  ;;  %p2582_p9 = scmp.lt.s32.totalorder %s810_s15, %s2505_s30  ;;  %v763_v24 = vrot.slane %v762_v49, 2  ;;  %v601_v29 = vsel %vm600_vm11, %v595_v10, 0.0  ;;  %v2662_v32 = vstv %s1324_s20 }
  0xac   : >> { %s1328_s3 = scalar_select %p2567_p13, 0, 1  ;;  %v569_v55 = vsel %vm568_vm4, %v563_v44, 0.0  ;;  %v731_v18 = vmax.f32 %v729_v48, %v730_v7  ;;  %v748_v30 = vmax.f32 %v746_v56, %v747_v13  ;;  %v779_v44 = vrot.slane %v778_v19, 2 }
  0xad   : >> { %s827_s5 = sadd.s32 2, %s2545_s23  ;;  %p813_p5 = pnand %p2582_p9, %p2572_p3  ;;  %v570_v9 = vadd.f32 %v569_v55, %v554_v51  ;;  %v764_v43 = vmax.f32 %v762_v49, %v763_v24  ;;  %vm739_vm4 = vcmp.eq.s32.totalorder %v738_v31, 1 }
  0xae   : >> { %v806_v54 = vstv %s1328_s3  ;;  %p2588_p10 = scmp.ge.s32.totalorder %s827_s5, %s2275_s7  ;;  %p2593_p1 = scmp.lt.s32.totalorder %s827_s5, %s2505_s30  ;;  %v732_v37 = vrot.slane %v731_v18, 1  ;;  %v749_v46 = vrot.slane %v748_v30, 1  ;;  %v780_v6 = vmax.f32 %v778_v19, %v779_v44 }
  0xaf   : >> { %s844_s0 = sadd.s32 3, %s2545_s23  ;;  %s2602_s4 = scalar_lea.vmem [#allocation5], %s1327_s21  ;;  %vm807_vm5 = vcmp.eq.s32.totalorder %v806_v54, 1  ;;  %v586_v28 = vadd.f32 %v585_v59, %v570_v9  ;;  %v765_v49 = vrot.slane %v764_v43, 1 }
  0xb0   : >> { %v803_v3 = vld [vmem:[%s2602_s4] sm:$0xff]  ;;  %v804_v5 = vld [vmem:[%s2602_s4 + $0x8] sm:$0xff]  ;;  %p830_p2 = pnand %p2593_p1, %p2588_p10  ;;  %p2611_p13 = scmp.ge.s32.totalorder %s844_s0, %s2275_s7  ;;  %v1331_v11 = vld [vmem:[%s2602_s4 + $0x10] sm:$0xff]  ;;  %v733_v54 = vmax.f32 %v731_v18, %v732_v37  ;;  %v750_v10 = vmax.f32 %v748_v30, %v749_v46 }
  0xb1   : >> { %s1333_s15 = scalar_select %p813_p5, 0, 1  ;;  %v1332_v12 = vld [vmem:[%s2602_s4 + $0x18] sm:$0xff]  ;;  %v808_v14 = vsel %vm807_vm5, %v803_v3, -inf  ;;  %v809_v15 = vsel %vm807_vm5, %v804_v5, -inf  ;;  %v1336_v22 = vld [vmem:[%s2602_s4 + $0x20] sm:$0xff]  ;;  %v602_v5 = vadd.f32 %v601_v29, %v586_v28 }
  0xb2   : >> { %s1338_s9 = scalar_select %p830_p2, 0, 1  ;;  %v1337_v60 = vld [vmem:[%s2602_s4 + $0x28] sm:$0xff]  ;;  %v1341_v35 = vld [vmem:[%s2602_s4 + $0x30] sm:$0xff]  ;;  %v1342_v36 = vld [vmem:[%s2602_s4 + $0x38] sm:$0xff]  ;;  %vm755_vm5 = vcmp.eq.s32.totalorder %v2662_v32, 1 }
  0xb3   : >> { %v821_v16 = vstv %s1333_s15  ;;  %p2623_p7 = scmp.lt.s32.totalorder %s844_s0, %s2505_s30  ;;  %s861_s19 = sadd.s32 4, %s2545_s23  ;;  %v1346_v41 = vld [vmem:[%s2602_s4 + $0x40] sm:$0xff]  ;;  %v1347_v42 = vld [vmem:[%s2602_s4 + $0x48] sm:$0xff]  ;;  %v1351_v57 = vld [vmem:[%s2602_s4 + $0x50] sm:$0xff]  ;;  %v756_v24 = vsel %vm755_vm5, %v750_v10, 0.0 }
  0xb4   : >> { %vm822_vm12 = vcmp.eq.s32.totalorder %v821_v16, 1  ;;  %p2630_p3 = scmp.ge.s32.totalorder %s861_s19, %s2275_s7  ;;  %p2635_p9 = scmp.lt.s32.totalorder %s861_s19, %s2505_s30  ;;  %v838_v27 = vstv %s1338_s9  ;;  %v1352_v3 = vld [vmem:[%s2602_s4 + $0x58] sm:$0xff]  ;;  %v1356_v8 = vld [vmem:[%s2602_s4 + $0x60] sm:$0xff]  ;;  %v1357_v9 = vld [vmem:[%s2602_s4 + $0x68] sm:$0xff] }
  0xb5   : >> { %v823_v20 = vsel %vm822_vm12, %v1331_v11, -inf  ;;  %v824_v21 = vsel %vm822_vm12, %v1332_v12, -inf  ;;  %p847_p10 = pnand %p2623_p7, %p2611_p13  ;;  %s878_s3 = sadd.s32 5, %s2545_s23  ;;  %vm839_vm14 = vcmp.eq.s32.totalorder %v838_v27, 1  ;;  %v740_v12 = vsel %vm739_vm4, %v733_v54, 0.0 }
  0xb6   : >> { %v825_v25 = vmax.f32 %v808_v14, %v823_v20  ;;  %v826_v26 = vmax.f32 %v809_v15, %v824_v21  ;;  %p864_p1 = pnand %p2635_p9, %p2630_p3  ;;  %p2651_p5 = scmp.ge.s32.totalorder %s878_s3, %s2275_s7  ;;  %v840_v33 = vsel %vm839_vm14, %v1336_v22, -inf  ;;  %v841_v34 = vsel %vm839_vm14, %v1337_v60, -inf }
  0xb7   : >> { %s1343_s5 = scalar_select %p847_p10, 0, 1  ;;  %v741_v60 = vadd.f32 %v740_v12, %v602_v5 }
  0xb8   : >> { %s1348_s22 = scalar_select %p864_p1, 0, 1  ;;  %v842_v38 = vmax.f32 %v825_v25, %v840_v33  ;;  %v843_v39 = vmax.f32 %v826_v26, %v841_v34  ;;  %v766_v25 = vmax.f32 %v764_v43, %v765_v49  ;;  %v781_v26 = vrot.slane %v780_v6, 1 }
  0xb9   : >> { %v855_v40 = vstv %s1343_s5  ;;  %p2669_p6 = scmp.lt.s32.totalorder %s878_s3, %s2505_s30  ;;  %s895_s28 = sadd.s32 6, %s2545_s23  ;;  %v757_v23 = vadd.f32 %v756_v24, %v741_v60 }
  0xba   : >> { %vm856_vm15 = vcmp.eq.s32.totalorder %v855_v40, 1  ;;  %v872_v45 = vstv %s1348_s22  ;;  %p2675_p11 = scmp.ge.s32.totalorder %s895_s28, %s2275_s7  ;;  %p2680_p2 = scmp.lt.s32.totalorder %s895_s28, %s2505_s30  ;;  %v782_v62 = vmax.f32 %v780_v6, %v781_v26 }
  0xbb   : >> { %p3004_p13 = scmp.gt.s32.totalorder %s1872_s27, %s1854_s12  ;;  %v857_v47 = vsel %vm856_vm15, %v1341_v35, -inf  ;;  %v858_v48 = vsel %vm856_vm15, %v1342_v36, -inf  ;;  %vm873_vm3 = vcmp.eq.s32.totalorder %v872_v45, 1  ;;  %p881_p3 = pnand %p2669_p6, %p2651_p5 }
  0xbc   : >> { %p2704_p9 = pnand %p734_p0, %p408_p12  ;;  %v859_v50 = vmax.f32 %v842_v38, %v857_v47  ;;  %v860_v51 = vmax.f32 %v843_v39, %v858_v48  ;;  %v874_v52 = vsel %vm873_vm3, %v1346_v41, -inf  ;;  %v875_v53 = vsel %vm873_vm3, %v1347_v42, -inf  ;;  %p898_p10 = pnand %p2680_p2, %p2675_p11 }
  0xbd   : >> { %p2690_p7 = pnand %p734_p0, %p3004_p13  ;;  %p921_p0 = scmp.gt.s32.totalorder %s2505_s30, %s2275_s7 }
  0xbe   : >> { %s1353_s0 = scalar_select %p881_p3, 0, 1  ;;  %v876_v55 = vmax.f32 %v859_v50, %v874_v52  ;;  %v877_v56 = vmax.f32 %v860_v51, %v875_v53 }
  0xbf   : >> { %s1358_s18 = scalar_select %p898_p10, 0, 1 }
  0xc0   : >> { %s1325_s1 = scalar_select %p2690_p7, 0, 1  ;;  %v889_v7 = vstv %s1353_s0 }
  0xc1   : >> { %s1326_s13 = scalar_select %p2704_p9, 0, 1  ;;  %vm890_vm10 = vcmp.eq.s32.totalorder %v889_v7, 1  ;;  %v906_v11 = vstv %s1358_s18 }
  0xc2   : >> { %v891_v13 = vsel %vm890_vm10, %v1351_v57, -inf  ;;  %v892_v14 = vsel %vm890_vm10, %v1352_v3, -inf  ;;  %vm907_vm11 = vcmp.eq.s32.totalorder %v906_v11, 1  ;;  %v770_v19 = vstv %s1325_s1  ;;  %p3007_p1 = scmp.gt.s32.totalorder %s1715_s8, %s1712_s6  ;;  %p3009_p6 = scmp.gt.s32.totalorder %s1726_s25, %s1721_s11 }
  0xc3   : >> { %v893_v15 = vmax.f32 %v876_v55, %v891_v13  ;;  %v894_v16 = vmax.f32 %v877_v56, %v892_v14  ;;  %v908_v59 = vsel %vm907_vm11, %v1356_v8, -inf  ;;  %v909_v18 = vsel %vm907_vm11, %v1357_v9, -inf  ;;  %p3011_p2 = pmov %p3004_p13  ;;  %p2778_p7 = pnand %p921_p0, %p408_p12 }
  0xc4   : >> { %v786_v20 = vstv %s1326_s13  ;;  %p2736_p5 = pnand %p921_p0, %p3007_p1  ;;  %p2750_p11 = pnand %p921_p0, %p3009_p6 }
  0xc5   : >> { %v910_v21 = vmax.f32 %v893_v15, %v908_v59  ;;  %v911_v22 = vmax.f32 %v894_v16, %v909_v18  ;;  %p2768_p13 = pnand %p921_p0, %p3011_p2  ;;  %s3015_s7 = sld [smem:[#allocation22_spill]] }
  0xc6   : >> { %s1359_s25 = scalar_select %p2736_p5, 0, 1 }
  0xc7   : >> { %v912_v27 = vsel %vm2009_vm13, %v910_v21, -inf  ;;  %v913_v28 = vsel %vm2021_vm0, %v911_v22, -inf  ;;  %v929_v58 = vsel %vm2033_vm1, %v910_v21, -inf  ;;  %v930_v61 = vsel %vm2047_vm2, %v911_v22, -inf  ;;  %s1360_s12 = scalar_select %p2750_p11, 0, 1 }
  0xc8   : >> { %v914_v29 = vmax.f32 %v912_v27, %v913_v28  ;;  %v931_v30 = vmax.f32 %v929_v58, %v930_v61  ;;  %v945_v0 = vsel %vm2112_vm8, %v910_v21, -inf  ;;  %v946_v31 = vsel %vm2129_vm9, %v911_v22, -inf  ;;  %s1361_s27 = scalar_select %p2768_p13, 0, 1 }
  0xc9   : >> { %vm771_vm13 = vcmp.eq.s32.totalorder %v770_v19, 1  ;;  %v947_v32 = vmax.f32 %v945_v0, %v946_v31  ;;  %v961_v4 = vsel %vm2234_vm6, %v910_v21, -inf  ;;  %v962_v33 = vsel %vm2240_vm7, %v911_v22, -inf  ;;  %s1362_s17 = scalar_select %p2778_p7, 0, 1 }
  0xca   : >> { %v915_v34 = vrot.slane %v914_v29, 4  ;;  %v932_v35 = vrot.slane %v931_v30, 4  ;;  %v963_v17 = vmax.f32 %v961_v4, %v962_v33  ;;  %vm787_vm0 = vcmp.eq.s32.totalorder %v786_v20, 1 }
  0xcb   : >> { %v948_v63 = vrot.slane %v947_v32, 4  ;;  %v772_v36 = vsel %vm771_vm13, %v766_v25, 0.0  ;;  %v788_v45 = vsel %vm787_vm0, %v782_v62, 0.0  ;;  %v925_v46 = vstv %s1359_s25  ;;  %s3016_s30 = scalar_lea.vmem [#allocation8], %s3015_s7 }
  0xcc   : >> { %v916_v37 = vmax.f32 %v914_v29, %v915_v34  ;;  %v933_v38 = vmax.f32 %v931_v30, %v932_v35  ;;  %v964_v39 = vrot.slane %v963_v17, 4  ;;  %v773_v44 = vadd.f32 %v772_v36, %v757_v23  ;;  %s978_s15 = scalar_lea.vmem %s3016_s30, %s3014_s2 [#allocation8] }
  0xcd   : >> { %v949_v40 = vmax.f32 %v947_v32, %v948_v63  ;;  %v941_v51 = vstv %s1360_s12  ;;  %v957_v56 = vstv %s1361_s27  ;;  %vm926_vm1 = vcmp.eq.s32.totalorder %v925_v46, 1 }
  0xce   : >> { %v917_v41 = vrot.slane %v916_v37, 2  ;;  %v934_v42 = vrot.slane %v933_v38, 2  ;;  %v965_v43 = vmax.f32 %v963_v17, %v964_v39  ;;  %v789_v3 = vadd.f32 %v788_v45, %v773_v44 }
  0xcf   : >> { %v950_v47 = vrot.slane %v949_v40, 2  ;;  %vm942_vm2 = vcmp.eq.s32.totalorder %v941_v51, 1  ;;  %v973_v9 = vstv %s1362_s17  ;;  %vm958_vm8 = vcmp.eq.s32.totalorder %v957_v56, 1 }
  0xd0   : >> { %v918_v48 = vmax.f32 %v916_v37, %v917_v41  ;;  %v935_v50 = vmax.f32 %v933_v38, %v934_v42  ;;  %v966_v52 = vrot.slane %v965_v43, 2  ;;  %vm974_vm9 = vcmp.eq.s32.totalorder %v973_v9, 1 }
  0xd1   : >> { %v951_v53 = vmax.f32 %v949_v40, %v950_v47 }
  0xd2   : >> { %v919_v54 = vrot.slane %v918_v48, 1  ;;  %v936_v55 = vrot.slane %v935_v50, 1  ;;  %v967_v57 = vmax.f32 %v965_v43, %v966_v52 }
  0xd3   : >> { %v952_v5 = vrot.slane %v951_v53, 1 }
  0xd4   : >> { %v920_v6 = vmax.f32 %v918_v48, %v919_v54  ;;  %v937_v7 = vmax.f32 %v935_v50, %v936_v55  ;;  %v968_v8 = vrot.slane %v967_v57, 1 }
  0xd5   : >> { %v953_v10 = vmax.f32 %v951_v53, %v952_v5 }
  0xd6   : >> { %v927_v49 = vsel %vm926_vm1, %v920_v6, 0.0  ;;  %v943_v11 = vsel %vm942_vm2, %v937_v7, 0.0  ;;  %v969_v12 = vmax.f32 %v967_v57, %v968_v8 }
  0xd7   : >> { %v928_v13 = vadd.f32 %v927_v49, %v789_v3  ;;  %v959_v14 = vsel %vm958_vm8, %v953_v10, 0.0 }
  0xd8   : >> { %v975_v16 = vsel %vm974_vm9, %v969_v12, 0.0 }
  0xd9   : >> { %v944_v15 = vadd.f32 %v943_v11, %v928_v13 }
  0xdb   : >> { %v960_v59 = vadd.f32 %v959_v14, %v944_v15 }
  0xdd   : >> { %v976_v18 = vadd.f32 %v975_v16, %v960_v59 }
  0xdf   : >> { %v977_v19 = vmul.f32 0.0625, %v976_v18 }
  0xe1   : >> { %979 = vst [vmem:[%s978_s15] sm:$0x1] %v977_v19  ;;  %s156_s15 = sadd.s32 1, %s3014_s2  }
  0xe2   : >> { %p153_p12 = scmp.ge.s32.totalorder %s156_s15, 8  }
  0xe3   : > { %s3017_s9 = sld [smem:[#allocation15_spill]] (%p153_p12) }
  0xe4   : > { %155 = sbr.rel (!%p153_p12) target bundleno = 44 (0x2c), region = 98  ;;  %s3019_s10 = sld [smem:[#allocation25_spill]] (%p153_p12) }
  0xe5   : > { %s3020_s3 = sld [smem:[#allocation22_spill]] (%p153_p12) }
  0xe6   : > { %s3021_s24 = sld [smem:[#allocation13_spill]] (%p153_p12) }
  0xe9   : > { %s3018_s29 = sshll.u32 %s3017_s9, 3 }
  0xea   : > { %s992_s22 = scalar_lea.hbm %s3019_s10, %s3018_s29  ;;  %s1519_s13 = scalar_lea.hbm %s3019_s10, 16 }
  0xeb   : > { %s3023_s26 = scalar_lea.vmem [#allocation8], %s3020_s3  ;;  %s996_s14 = sshll.u32 %s992_s22, 4  ;;  %s997_s14 = int_to_ptr.hbm [resolvable:$true] %s996_s14 }
  0xec   : > { %s994_s28 = sshll.u32 %s3023_s26, 4  ;;  %s3024_s20 = sand.u32 1, %s3021_s24   ;;  %s995_s28 = int_to_ptr.vmem [resolvable:$true] %s994_s28 }
  0xed   : > { %s981_s16 = scalar_lea.sflag [#allocation7], %s3024_s20  ;;  %s1513_s23 = sshra.s32 %s997_s14, 4  ;;  %s1514_s23 = int_to_ptr.hbm [resolvable:$true] %s1513_s23 }
  0xee   : > { %s1515_s0 = scalar_lea.hbm %s1514_s23, 8  ;;  %p1520_p0 = scmp.lt.s32.totalorder %s1514_s23, %s3019_s10 }
  0xef   : > { %p1516_p3 = scmp.ne.s32.totalorder %s1514_s23, %s1515_s0  ;;  %p1521_p1 = scmp.lt.s32.totalorder %s1519_s13, %s1515_s0 }
  0xf1   : > { %p1517_p9 = pnand %p1516_p3, %p1664_p4  ;;  %p1522_p5 = por %p1521_p1, %p1520_p0 }
  0xf3   : > { %p1518_p10 = pneg %p1517_p9 }
  0xf5   : > { %p1523_p6 = pnand %p1522_p5, %p1518_p10 }
  0xf7   : > { %1526 = shalt.err (!%p1523_p6)
}
  0xf8   : > { %1371 = dma.vmem_to_hbm [thread:$0]  (%p1664_p4), %s995_s28, 128, %s997_s14, %s981_s16  }
  0xf9 PF: > { %s3025_s8 = sld [smem:[#allocation17_spill]] }
  0xfa   : > { %s3026_s11 = sld [smem:[#allocation12_spill]] }
  0xff   : > { %p1383_p11 = scmp.ge.s32.totalorder %s3025_s8, 2 }
 0x100   : > { %s1008_s12 = sand.u32 1, %s3026_s11  }
 0x101   : > { %p1378_p2 = pnand %p1383_p11, %p1671_p8  ;;  %s1009_s27 = scalar_lea.sflag [#allocation7], %s1008_s12 }
 0x103   : > { %p1379_p13 = pneg %p1378_p2 }
 0x105   : > { %1562 = dma.done.wait (%p1379_p13), %s1009_s27, 128  }
 0x106   : > { %1564 = vsyncadd (%p1379_p13), %s1009_s27, 4294967168  ;;  %s30_s23 = sadd.s32 1, %s3025_s8   ;;  %s3028_s20 = sld [smem:[#allocation13_spill]] }
 0x107   : > { %p27_p7 = scmp.ge.s32.totalorder %s30_s23, 4   ;;  %s3029_s21 = sld [smem:[#allocation14_spill]] }
 0x108   : > { %s3030_s0 = sld [smem:[#allocation21_spill]] }
 0x109   : > { %s3031_s22 = sld [smem:[#allocation16_spill]]  ;;  %29 = sbr.rel (!%p27_p7) target bundleno = 13 (0xd), region = 109 }
 0x10a   : > { %s3032_s1 = sld [smem:[#allocation18_spill]] }
 0x10e   :  { %1015 = vsyncpa [#allocation6], 1 }
 0x10f   :  { %1017 = vsyncpa [#allocation6 + $0x1], 1 }
 0x110   :  { %1018 = vsyncpa [#allocation7], 1 }
 0x111   :  { %1020 = vsyncpa [#allocation7 + $0x1], 1 }

</bundles_post_ra>
